<compile_context>
chip_gen: v5e
topology: v5e:2x2
jax: 0.10.0
libtpu: 0.0.40
codegen_flags: <defaults>
</compile_context>

<pallas_src>
import jax
import jax.numpy as jnp
from jax.experimental import pallas as pl
from jax.experimental.pallas import tpu as pltpu


def dwconv_kernel(x_ref, w_ref, b_ref, o_ref, xp_ref):
    """One (batch-block, channel-block) tile of the depthwise 3x3 conv.

    x_ref:  (Bb, H, W, Cb)        unpadded input tile
    w_ref:  (3, 3, Cb)            per-channel taps
    b_ref:  (1, Cb)               bias
    o_ref:  (Bb, H, W, Cb)        output tile
    xp_ref: (Bb, H+2, W+2, Cb)    VMEM scratch holding the zero-haloed tile
    """
    Bb, H, W, Cb = o_ref.shape
    dt = xp_ref.dtype

    # Build the 1-pixel zero halo in VMEM (instead of a host-side jnp.pad that
    # costs a full extra HBM round trip): zero the 4 border strips, then copy
    # the interior.  Borders are re-zeroed every step so the kernel stays
    # correct under megacore grid splitting.
    xp_ref[:, 0:1, :, :] = jnp.zeros((Bb, 1, W + 2, Cb), dt)
    xp_ref[:, H + 1:H + 2, :, :] = jnp.zeros((Bb, 1, W + 2, Cb), dt)
    xp_ref[:, :, 0:1, :] = jnp.zeros((Bb, H + 2, 1, Cb), dt)
    xp_ref[:, :, W + 1:W + 2, :] = jnp.zeros((Bb, H + 2, 1, Cb), dt)
    xp_ref[:, 1:H + 1, 1:W + 1, :] = x_ref[...]

    # Factor the kw (width == sublane) shift out of the 3x3 loop: 3 shifted
    # slabs are materialized once; the kh offsets below are leading-dim slices
    # (pure vreg selection, no sublane realignment).
    slabs = [xp_ref[:, :, kw:kw + W, :].astype(jnp.float32) for kw in range(3)]

    bias = b_ref[0, :].astype(jnp.float32)             # (Cb,), broadcast on lanes
    # Fold the bias into the first MAC (saves zeros init + a full-tile add pass).
    acc = slabs[0][:, 0:H, :, :] * w_ref[0, 0, :].astype(jnp.float32) + bias
    for kh in range(3):
        for kw in range(3):
            if kh == 0 and kw == 0:
                continue
            tap = w_ref[kh, kw, :].astype(jnp.float32)  # (Cb,) per-channel tap
            acc = acc + slabs[kw][:, kh:kh + H, :, :] * tap
    o_ref[...] = acc.astype(o_ref.dtype)


def _choose_batch_block(B, H, W, c_blk, itemsize, budget_bytes=12 * 1024 * 1024):
    """How many images per grid step while keeping per-step VMEM bounded."""
    per_image = (H + 2) * (W + 2) * c_blk * itemsize
    # ~2x in + 2x out (double buffering) + halo scratch + 3 shifted slabs ~= 8x.
    b_blk = max(1, min(B, budget_bytes // max(1, per_image * 8)))
    while B % b_blk != 0:        # need a clean grid
        b_blk -= 1
    return b_blk


def dwconv(x, w, b, H, W):
    """x: (B, N, C) with N == H*W; w: (3, 3, C); b: (C,). Returns (B, N, C)."""
    B, N, C = x.shape
    assert N == H * W

    # Channel blocking: lane-dense (multiple of 128) when possible -> unmasked
    # vst on the output; otherwise take the full channel dim in one block.
    c_blk = 128 if C % 128 == 0 else C
    n_cblk = C // c_blk

    itemsize = jnp.dtype(x.dtype).itemsize
    b_blk = _choose_batch_block(B, H, W, c_blk, itemsize)
    n_bblk = B // b_blk

    x_img = x.reshape(B, H, W, C)       # metadata-only: n = h*W + w
    b2 = b.reshape(1, C)

    out = pl.pallas_call(
        dwconv_kernel,
        out_shape=jax.ShapeDtypeStruct((B, H, W, C), x.dtype),
        grid=(n_bblk, n_cblk),
        in_specs=[
            pl.BlockSpec((b_blk, H, W, c_blk), lambda bi, ci: (bi, 0, 0, ci)),
            pl.BlockSpec((3, 3, c_blk), lambda bi, ci: (0, 0, ci)),
            pl.BlockSpec((1, c_blk), lambda bi, ci: (0, ci)),
        ],
        out_specs=pl.BlockSpec((b_blk, H, W, c_blk), lambda bi, ci: (bi, 0, 0, ci)),
        scratch_shapes=[pltpu.VMEM((b_blk, H + 2, W + 2, c_blk), x.dtype)],
        compiler_params=pltpu.CompilerParams(
            dimension_semantics=("parallel", "parallel"),
            vmem_limit_bytes=48 * 1024 * 1024,
        ),
    )(x_img, w, b2)

    return out.reshape(B, N, C)


def dwconv_reference(x, w, b, H, W):
    """Pure-JAX reference matching PyTorch's grouped Conv2d semantics."""
    B, N, C = x.shape
    x_nchw = jnp.transpose(x.reshape(B, H, W, C), (0, 3, 1, 2))    # (B, C, H, W)
    w_oihw = jnp.transpose(w, (2, 0, 1))[:, None, :, :]             # (C, 1, 3, 3)
    y = jax.lax.conv_general_dilated(
        x_nchw, w_oihw, window_strides=(1, 1), padding=((1, 1), (1, 1)),
        feature_group_count=C,
        dimension_numbers=("NCHW", "OIHW", "NCHW"))
    y = y + b[None, :, None, None]
    return jnp.transpose(y.reshape(B, C, H * W), (0, 2, 1))         # (B, N, C)


if __name__ == "__main__":
    # Small but representative: C a multiple of 128 exercises the lane-dense
    # channel-block path (the module's default dim=768 is 6*128).
    B, C, H, W = 2, 256, 16, 16
    N = H * W

    key = jax.random.PRNGKey(0)
    kx, kw_, kb = jax.random.split(key, 3)
    x = jax.random.normal(kx, (B, N, C), dtype=jnp.float32)
    # Parameter init (shapes follow nn.Conv2d(dim, dim, 3, groups=dim)):
    # per-channel 3x3 taps + bias, stored in (3, 3, C) / (C,) kernel layout.
    w = jax.random.normal(kw_, (3, 3, C), dtype=jnp.float32) * 0.1
    b = jax.random.normal(kb, (C,), dtype=jnp.float32) * 0.1

    out = jax.block_until_ready(dwconv(x, w, b, H, W))

    ref = dwconv_reference(x, w, b, H, W)
    assert out.shape == (B, N, C)
    assert jnp.allclose(out, ref, atol=1e-5, rtol=1e-5), "mismatch vs reference"

    print("KERNEL_OK")
</pallas_src>

<mosaic_0001>
module attributes {stable_mosaic.version = 11 : i64} {
  func.func @dwconv_kernel(%arg0: i32, %arg1: i32, %arg2: memref<2x16x16x128xf32, #tpu.memory_space<vmem>>, %arg3: memref<3x3x128xf32, #tpu.memory_space<vmem>>, %arg4: memref<1x128xf32, #tpu.memory_space<vmem>>, %arg5: memref<2x16x16x128xf32, #tpu.memory_space<vmem>>, %arg6: memref<2x18x18x128xf32, #tpu.memory_space<vmem>>) attributes {dimension_semantics = [#tpu.dimension_semantics<parallel>, #tpu.dimension_semantics<parallel>], iteration_bounds = array<i64: 1, 2>, scalar_prefetch = 0 : i64, scratch_operands = 1 : i64, tpu.core_type = #tpu.core_type<tc>, window_params = [{transform_indices = @transform_0, window_bounds = array<i64: 2, 16, 16, 128>}, {transform_indices = @transform_1, window_bounds = array<i64: 3, 3, 128>}, {transform_indices = @transform_2, window_bounds = array<i64: 1, 128>}, {transform_indices = @transform_3, window_bounds = array<i64: 2, 16, 16, 128>}]} {
    %cst = arith.constant 0.000000e+00 : f32
    %0 = vector.broadcast %cst : f32 to vector<2x1x18x128xf32>
    %c0 = arith.constant 0 : index
    %c0_0 = arith.constant 0 : index
    %c0_1 = arith.constant 0 : index
    %c0_2 = arith.constant 0 : index
    %1 = vector.load %arg6[%c0, %c0_0, %c0_1, %c0_2] : memref<2x18x18x128xf32, #tpu.memory_space<vmem>>, vector<2x1x18x128xf32>
    tpu.vector_store %arg6[%c0, %c0_0, %c0_1, %c0_2], %0 {strides = array<i32>} : memref<2x18x18x128xf32, #tpu.memory_space<vmem>>, vector<2x1x18x128xf32>,
    %cst_3 = arith.constant 0.000000e+00 : f32
    %2 = vector.broadcast %cst_3 : f32 to vector<2x1x18x128xf32>
    %c0_4 = arith.constant 0 : index
    %c17 = arith.constant 17 : index
    %c0_5 = arith.constant 0 : index
    %c0_6 = arith.constant 0 : index
    %3 = vector.load %arg6[%c0_4, %c17, %c0_5, %c0_6] : memref<2x18x18x128xf32, #tpu.memory_space<vmem>>, vector<2x1x18x128xf32>
    tpu.vector_store %arg6[%c0_4, %c17, %c0_5, %c0_6], %2 {strides = array<i32>} : memref<2x18x18x128xf32, #tpu.memory_space<vmem>>, vector<2x1x18x128xf32>,
    %cst_7 = arith.constant 0.000000e+00 : f32
    %4 = vector.broadcast %cst_7 : f32 to vector<2x18x1x128xf32>
    %c0_8 = arith.constant 0 : index
    %c0_9 = arith.constant 0 : index
    %c0_10 = arith.constant 0 : index
    %c0_11 = arith.constant 0 : index
    %5 = vector.load %arg6[%c0_8, %c0_9, %c0_10, %c0_11] : memref<2x18x18x128xf32, #tpu.memory_space<vmem>>, vector<2x18x1x128xf32>
    tpu.vector_store %arg6[%c0_8, %c0_9, %c0_10, %c0_11], %4 {strides = array<i32>} : memref<2x18x18x128xf32, #tpu.memory_space<vmem>>, vector<2x18x1x128xf32>,
    %cst_12 = arith.constant 0.000000e+00 : f32
    %6 = vector.broadcast %cst_12 : f32 to vector<2x18x1x128xf32>
    %c0_13 = arith.constant 0 : index
    %c0_14 = arith.constant 0 : index
    %c17_15 = arith.constant 17 : index
    %c0_16 = arith.constant 0 : index
    %7 = vector.load %arg6[%c0_13, %c0_14, %c17_15, %c0_16] : memref<2x18x18x128xf32, #tpu.memory_space<vmem>>, vector<2x18x1x128xf32>
    tpu.vector_store %arg6[%c0_13, %c0_14, %c17_15, %c0_16], %6 {strides = array<i32>} : memref<2x18x18x128xf32, #tpu.memory_space<vmem>>, vector<2x18x1x128xf32>,
    %c0_17 = arith.constant 0 : index
    %c0_18 = arith.constant 0 : index
    %c0_19 = arith.constant 0 : index
    %c0_20 = arith.constant 0 : index
    %8 = vector.load %arg2[%c0_17, %c0_18, %c0_19, %c0_20] : memref<2x16x16x128xf32, #tpu.memory_space<vmem>>, vector<2x16x16x128xf32>
    %c0_21 = arith.constant 0 : index
    %c1 = arith.constant 1 : index
    %c1_22 = arith.constant 1 : index
    %c0_23 = arith.constant 0 : index
    %9 = vector.load %arg6[%c0_21, %c1, %c1_22, %c0_23] : memref<2x18x18x128xf32, #tpu.memory_space<vmem>>, vector<2x16x16x128xf32>
    tpu.vector_store %arg6[%c0_21, %c1, %c1_22, %c0_23], %8 {strides = array<i32>} : memref<2x18x18x128xf32, #tpu.memory_space<vmem>>, vector<2x16x16x128xf32>,
    %c0_24 = arith.constant 0 : index
    %c0_25 = arith.constant 0 : index
    %c0_26 = arith.constant 0 : index
    %c0_27 = arith.constant 0 : index
    %10 = vector.load %arg6[%c0_24, %c0_25, %c0_26, %c0_27] : memref<2x18x18x128xf32, #tpu.memory_space<vmem>>, vector<2x18x16x128xf32>
    %c0_28 = arith.constant 0 : index
    %c0_29 = arith.constant 0 : index
    %c1_30 = arith.constant 1 : index
    %c0_31 = arith.constant 0 : index
    %11 = vector.load %arg6[%c0_28, %c0_29, %c1_30, %c0_31] : memref<2x18x18x128xf32, #tpu.memory_space<vmem>>, vector<2x18x16x128xf32>
    %c0_32 = arith.constant 0 : index
    %c0_33 = arith.constant 0 : index
    %c2 = arith.constant 2 : index
    %c0_34 = arith.constant 0 : index
    %12 = vector.load %arg6[%c0_32, %c0_33, %c2, %c0_34] : memref<2x18x18x128xf32, #tpu.memory_space<vmem>>, vector<2x18x16x128xf32>
    %c0_35 = arith.constant 0 : index
    %c0_36 = arith.constant 0 : index
    %13 = vector.load %arg4[%c0_35, %c0_36] : memref<1x128xf32, #tpu.memory_space<vmem>>, vector<1x128xf32>
    %14 = vector.shape_cast %13 : vector<1x128xf32> to vector<128xf32>
    %15 = vector.extract_strided_slice %10 {offsets = [0, 0, 0, 0], sizes = [2, 16, 16, 128], strides = [1, 1, 1, 1]} : vector<2x18x16x128xf32> to vector<2x16x16x128xf32>
    %c0_37 = arith.constant 0 : index
    %c0_38 = arith.constant 0 : index
    %c0_39 = arith.constant 0 : index
    %16 = vector.load %arg3[%c0_37, %c0_38, %c0_39] : memref<3x3x128xf32, #tpu.memory_space<vmem>>, vector<1x1x128xf32>
    %17 = vector.shape_cast %16 : vector<1x1x128xf32> to vector<128xf32>
    %18 = vector.shape_cast %17 : vector<128xf32> to vector<1x1x1x128xf32>
    %19 = vector.broadcast %18 : vector<1x1x1x128xf32> to vector<2x16x16x128xf32>
    %20 = arith.mulf %15, %19 : vector<2x16x16x128xf32>
    %21 = vector.shape_cast %14 : vector<128xf32> to vector<1x1x1x128xf32>
    %22 = vector.broadcast %21 : vector<1x1x1x128xf32> to vector<2x16x16x128xf32>
    %23 = arith.addf %20, %22 : vector<2x16x16x128xf32>
    %c0_40 = arith.constant 0 : index
    %c1_41 = arith.constant 1 : index
    %c0_42 = arith.constant 0 : index
    %24 = vector.load %arg3[%c0_40, %c1_41, %c0_42] : memref<3x3x128xf32, #tpu.memory_space<vmem>>, vector<1x1x128xf32>
    %25 = vector.shape_cast %24 : vector<1x1x128xf32> to vector<128xf32>
    %26 = vector.extract_strided_slice %11 {offsets = [0, 0, 0, 0], sizes = [2, 16, 16, 128], strides = [1, 1, 1, 1]} : vector<2x18x16x128xf32> to vector<2x16x16x128xf32>
    %27 = vector.shape_cast %25 : vector<128xf32> to vector<1x1x1x128xf32>
    %28 = vector.broadcast %27 : vector<1x1x1x128xf32> to vector<2x16x16x128xf32>
    %29 = arith.mulf %26, %28 : vector<2x16x16x128xf32>
    %30 = arith.addf %23, %29 : vector<2x16x16x128xf32>
    %c0_43 = arith.constant 0 : index
    %c2_44 = arith.constant 2 : index
    %c0_45 = arith.constant 0 : index
    %31 = vector.load %arg3[%c0_43, %c2_44, %c0_45] : memref<3x3x128xf32, #tpu.memory_space<vmem>>, vector<1x1x128xf32>
    %32 = vector.shape_cast %31 : vector<1x1x128xf32> to vector<128xf32>
    %33 = vector.extract_strided_slice %12 {offsets = [0, 0, 0, 0], sizes = [2, 16, 16, 128], strides = [1, 1, 1, 1]} : vector<2x18x16x128xf32> to vector<2x16x16x128xf32>
    %34 = vector.shape_cast %32 : vector<128xf32> to vector<1x1x1x128xf32>
    %35 = vector.broadcast %34 : vector<1x1x1x128xf32> to vector<2x16x16x128xf32>
    %36 = arith.mulf %33, %35 : vector<2x16x16x128xf32>
    %37 = arith.addf %30, %36 : vector<2x16x16x128xf32>
    %c1_46 = arith.constant 1 : index
    %c0_47 = arith.constant 0 : index
    %c0_48 = arith.constant 0 : index
    %38 = vector.load %arg3[%c1_46, %c0_47, %c0_48] : memref<3x3x128xf32, #tpu.memory_space<vmem>>, vector<1x1x128xf32>
    %39 = vector.shape_cast %38 : vector<1x1x128xf32> to vector<128xf32>
    %40 = vector.extract_strided_slice %10 {offsets = [0, 1, 0, 0], sizes = [2, 16, 16, 128], strides = [1, 1, 1, 1]} : vector<2x18x16x128xf32> to vector<2x16x16x128xf32>
    %41 = vector.shape_cast %39 : vector<128xf32> to vector<1x1x1x128xf32>
    %42 = vector.broadcast %41 : vector<1x1x1x128xf32> to vector<2x16x16x128xf32>
    %43 = arith.mulf %40, %42 : vector<2x16x16x128xf32>
    %44 = arith.addf %37, %43 : vector<2x16x16x128xf32>
    %c1_49 = arith.constant 1 : index
    %c1_50 = arith.constant 1 : index
    %c0_51 = arith.constant 0 : index
    %45 = vector.load %arg3[%c1_49, %c1_50, %c0_51] : memref<3x3x128xf32, #tpu.memory_space<vmem>>, vector<1x1x128xf32>
    %46 = vector.shape_cast %45 : vector<1x1x128xf32> to vector<128xf32>
    %47 = vector.extract_strided_slice %11 {offsets = [0, 1, 0, 0], sizes = [2, 16, 16, 128], strides = [1, 1, 1, 1]} : vector<2x18x16x128xf32> to vector<2x16x16x128xf32>
    %48 = vector.shape_cast %46 : vector<128xf32> to vector<1x1x1x128xf32>
    %49 = vector.broadcast %48 : vector<1x1x1x128xf32> to vector<2x16x16x128xf32>
    %50 = arith.mulf %47, %49 : vector<2x16x16x128xf32>
    %51 = arith.addf %44, %50 : vector<2x16x16x128xf32>
    %c1_52 = arith.constant 1 : index
    %c2_53 = arith.constant 2 : index
    %c0_54 = arith.constant 0 : index
    %52 = vector.load %arg3[%c1_52, %c2_53, %c0_54] : memref<3x3x128xf32, #tpu.memory_space<vmem>>, vector<1x1x128xf32>
    %53 = vector.shape_cast %52 : vector<1x1x128xf32> to vector<128xf32>
    %54 = vector.extract_strided_slice %12 {offsets = [0, 1, 0, 0], sizes = [2, 16, 16, 128], strides = [1, 1, 1, 1]} : vector<2x18x16x128xf32> to vector<2x16x16x128xf32>
    %55 = vector.shape_cast %53 : vector<128xf32> to vector<1x1x1x128xf32>
    %56 = vector.broadcast %55 : vector<1x1x1x128xf32> to vector<2x16x16x128xf32>
    %57 = arith.mulf %54, %56 : vector<2x16x16x128xf32>
    %58 = arith.addf %51, %57 : vector<2x16x16x128xf32>
    %c2_55 = arith.constant 2 : index
    %c0_56 = arith.constant 0 : index
    %c0_57 = arith.constant 0 : index
    %59 = vector.load %arg3[%c2_55, %c0_56, %c0_57] : memref<3x3x128xf32, #tpu.memory_space<vmem>>, vector<1x1x128xf32>
    %60 = vector.shape_cast %59 : vector<1x1x128xf32> to vector<128xf32>
    %61 = vector.extract_strided_slice %10 {offsets = [0, 2, 0, 0], sizes = [2, 16, 16, 128], strides = [1, 1, 1, 1]} : vector<2x18x16x128xf32> to vector<2x16x16x128xf32>
    %62 = vector.shape_cast %60 : vector<128xf32> to vector<1x1x1x128xf32>
    %63 = vector.broadcast %62 : vector<1x1x1x128xf32> to vector<2x16x16x128xf32>
    %64 = arith.mulf %61, %63 : vector<2x16x16x128xf32>
    %65 = arith.addf %58, %64 : vector<2x16x16x128xf32>
    %c2_58 = arith.constant 2 : index
    %c1_59 = arith.constant 1 : index
    %c0_60 = arith.constant 0 : index
    %66 = vector.load %arg3[%c2_58, %c1_59, %c0_60] : memref<3x3x128xf32, #tpu.memory_space<vmem>>, vector<1x1x128xf32>
    %67 = vector.shape_cast %66 : vector<1x1x128xf32> to vector<128xf32>
    %68 = vector.extract_strided_slice %11 {offsets = [0, 2, 0, 0], sizes = [2, 16, 16, 128], strides = [1, 1, 1, 1]} : vector<2x18x16x128xf32> to vector<2x16x16x128xf32>
    %69 = vector.shape_cast %67 : vector<128xf32> to vector<1x1x1x128xf32>
    %70 = vector.broadcast %69 : vector<1x1x1x128xf32> to vector<2x16x16x128xf32>
    %71 = arith.mulf %68, %70 : vector<2x16x16x128xf32>
    %72 = arith.addf %65, %71 : vector<2x16x16x128xf32>
    %c2_61 = arith.constant 2 : index
    %c2_62 = arith.constant 2 : index
    %c0_63 = arith.constant 0 : index
    %73 = vector.load %arg3[%c2_61, %c2_62, %c0_63] : memref<3x3x128xf32, #tpu.memory_space<vmem>>, vector<1x1x128xf32>
    %74 = vector.shape_cast %73 : vector<1x1x128xf32> to vector<128xf32>
    %75 = vector.extract_strided_slice %12 {offsets = [0, 2, 0, 0], sizes = [2, 16, 16, 128], strides = [1, 1, 1, 1]} : vector<2x18x16x128xf32> to vector<2x16x16x128xf32>
    %76 = vector.shape_cast %74 : vector<128xf32> to vector<1x1x1x128xf32>
    %77 = vector.broadcast %76 : vector<1x1x1x128xf32> to vector<2x16x16x128xf32>
    %78 = arith.mulf %75, %77 : vector<2x16x16x128xf32>
    %79 = arith.addf %72, %78 : vector<2x16x16x128xf32>
    %c0_64 = arith.constant 0 : index
    %c0_65 = arith.constant 0 : index
    %c0_66 = arith.constant 0 : index
    %c0_67 = arith.constant 0 : index
    %80 = vector.load %arg5[%c0_64, %c0_65, %c0_66, %c0_67] : memref<2x16x16x128xf32, #tpu.memory_space<vmem>>, vector<2x16x16x128xf32>
    tpu.vector_store %arg5[%c0_64, %c0_65, %c0_66, %c0_67], %79 {strides = array<i32>} : memref<2x16x16x128xf32, #tpu.memory_space<vmem>>, vector<2x16x16x128xf32>,
    return
  }
  func.func @transform_0(%arg0: i32, %arg1: i32) -> (i32, i32, i32, i32) {
    %c0_i32 = arith.constant 0 : i32
    %c0_i32_0 = arith.constant 0 : i32
    %c0_i32_1 = arith.constant 0 : i32
    return %arg0, %c0_i32, %c0_i32_0, %arg1 : i32, i32, i32, i32
  }
  func.func @transform_1(%arg0: i32, %arg1: i32) -> (i32, i32, i32) {
    %c0_i32 = arith.constant 0 : i32
    %c0_i32_0 = arith.constant 0 : i32
    %c0_i32_1 = arith.constant 0 : i32
    return %c0_i32, %c0_i32_0, %arg1 : i32, i32, i32
  }
  func.func @transform_2(%arg0: i32, %arg1: i32) -> (i32, i32) {
    %c0_i32 = arith.constant 0 : i32
    %c0_i32_0 = arith.constant 0 : i32
    return %c0_i32, %arg1 : i32, i32
  }
  func.func @transform_3(%arg0: i32, %arg1: i32) -> (i32, i32, i32, i32) {
    %c0_i32 = arith.constant 0 : i32
    %c0_i32_0 = arith.constant 0 : i32
    %c0_i32_1 = arith.constant 0 : i32
    return %arg0, %c0_i32, %c0_i32_0, %arg1 : i32, i32, i32, i32
  }
}

</mosaic_0001>

<bundles_post_ra>
// kernel: tpu_custom_call.1
= control target key start
LH: loop header
LB: loop body
LE: loop exit
PB: predicated region body
PF: predicated region fallthrough
CT: control target
= control target key end

     0   :  { %s3805_s0 = inlined_call_operand.hbm [shape: f32[2,16,16,256], index: 0, kind: input, shape index: {}]   ;;  %s3806_s1 = inlined_call_operand.hbm [shape: f32[3,3,256], index: 1, kind: input, shape index: {}]   ;;  %s3807_s2 = inlined_call_operand.hbm [shape: f32[1,256], index: 2, kind: input, shape index: {}]   ;;  %s3808_s3 = inlined_call_operand.hbm [shape: f32[2,16,16,256], index: 3, kind: output, shape index: {}]  }
   0x1   :  { %3827 = sst [smem:[#allocation29_spill]] %s3806_s1 }
   0x2   :  { %8 = vsyncpa [#allocation4], 0 }
   0x3   :  { %10 = vsyncpa [#allocation4 + $0x1], 0 }
   0x4   :  { %11 = vsyncpa [#allocation7], 0 }
   0x5   :  { %13 = vsyncpa [#allocation7 + $0x1], 0 }
   0x6   :  { %14 = vsyncpa [#allocation5], 0 }
   0x7   :  { %16 = vsyncpa [#allocation5 + $0x1], 0  ;;  %s2440_s12 = smov 0   ;;  %s2442_s13 = smov 0  }
   0x8   :  { %s2444_s14 = smov 0   ;;  %s2446_s15 = smov 0  }
   0x9   :  { %s2448_s16 = smov 0   ;;  %s2450_s17 = smov 0  }
   0xa LB: > { %3828 = sst [smem:[#allocation13_spill]] %s2389_s12  ;;  %s2471_s18 = sadd.s32 4294967295, %s2409_s17   ;;  %s2409_s17 = sphi %s2450_s17, %s22_s17   ;;  %s2405_s16 = sphi %s2448_s16, %s3870_s16   ;;  %s2401_s15 = sphi %s2446_s15, %s3869_s15   ;;  %s2397_s14 = sphi %s2444_s14, %s3865_s14   ;;  %s2393_s13 = sphi %s2442_s13, %s3868_s13   ;;  %s2389_s12 = sphi %s2440_s12, %s3867_s12  }
   0xb   : > { %3829 = sst [smem:[#allocation14_spill]] %s2397_s14  ;;  %s2097_s19 = sadd.s32 4294967294, %s2409_s17  }
   0xc   : > { %3830 = sst [smem:[#allocation15_spill]] %s2409_s17  ;;  %s31_s20 = sadd.s32 1, %s2405_s16 }
   0xd   : > { %s43_s21 = sadd.s32 1, %s2397_s14  ;;  %p32_p0 = scmp.ge.s32.totalorder %s31_s20, 2 }
   0xe   : > { %p50_p1 = scmp.ne.s32.totalorder %s2397_s14, %s2393_s13  ;;  %p51_p2 = scmp.eq.s32.totalorder %s2409_s17, 0 }
   0xf   : > { %p56_p3 = scmp.ne.s32.totalorder %s2393_s13, %s2389_s12  ;;  %s3872_s20 = smov (%p32_p0, %s31_s20), 0 }
  0x10   : > { %3831 = sst [smem:[#allocation16_spill]] %s3872_s20  ;;  %p2483_p4 = por %p51_p2, %p50_p1 }
  0x11   : > { %p57_p5 = scmp.eq.s32.totalorder %s2471_s18, 0  ;;  %s39_s23 = ssub.s32 %s2405_s16, %s3872_s20 }
  0x12   : > { %p134_p6 = scmp.eq.s32.totalorder %s2471_s18, 1  ;;  %p41_p7 = scmp.eq.s32.totalorder %s39_s23, 0 }
  0x13   : > { %p2491_p8 = por %p57_p5, %p56_p3  ;;  %p140_p10 = scmp.eq.s32.totalorder %s2097_s19, 1 }
  0x14   : > { %p2495_p9 = por %p134_p6, %p50_p1  ;;  %p2099_p12 = scmp.ge.s32.totalorder %s2409_s17, 2 }
  0x15   : > { %s2500_s26 = scalar_select %p41_p7, %s2397_s14, %s43_s21  }
  0x16   : > { %p2502_p11 = por %p140_p10, %p56_p3  ;;  %p2140_p13 = scmp.lt.s32.totalorder %s2409_s17, 2 }
  0x17   : > { %3835 = sst [smem:[#allocation17_spill]] %s2500_s26  ;;  %s2509_s28 = sand.u32 1, %s2397_s14  }
  0x18   : > { %s3836_s27 = scalar_select %p2502_p11, 1, 0 }
  0x19   : > { %s184_s29 = sand.u32 1, %s2409_s17   ;;  %p2514_p0 = pnand %p2140_p13, %p2483_p4 }
  0x1a   : > { %3837 = sst [smem:[#allocation18_spill]] %s3836_s27  ;;  %s2116_s4 = smul.u32 12, %s2509_s28 }
  0x1b   : > { %s2102_s5 = sshll.u32 %s2405_s16, 2  ;;  %s3839_s1 = sld [smem:[#allocation29_spill]] }
  0x1c   : > { %s188_s10 = scalar_lea.vmem [#allocation6], %s2116_s4  ;;  %p2103_p1 = scmp.ge.s32.totalorder %s2409_s17, 1 }
  0x1d   : > { %s195_s11 = sshll.u32 %s188_s10, 4  ;;  %s185_s19 = scalar_lea.sflag [#allocation7], %s184_s29  ;;  %s196_s11 = int_to_ptr.vmem [resolvable:$true] %s195_s11 }
  0x1e   : > { %s2411_s21 = smov 128   ;;  %s2412_s22 = smov 64  }
  0x1f   : > { %s2413_s23 = smov 4   ;;  %p220_p2 = scmp.lt.s32.totalorder %s2409_s17, 3 }
  0x20   : > { %s2101_s4 = sshll.u32 %s2405_s16, 3  ;;  %s161_s26 = scalar_lea.sflag [#allocation4], %s2509_s28 }
  0x21   : > { %s192_s8 = scalar_lea.hbm %s3839_s1, %s2102_s5  ;;  %p2527_p3 = pnand %p2103_p1, %p220_p2 }
  0x22   : > { %s193_s9 = sshll.u32 %s192_s8, 4  ;;  %s2100_s5 = sshll.u32 %s2509_s28, 9  ;;  %s194_s9 = int_to_ptr.hbm [resolvable:$true] %s193_s9 }
  0x23   : > { %2132 = dma.hbm_to_vmem [thread:$0]  (!%p2514_p0), %s194_s9, 192, %s196_s11, %s185_s19, %s2411_s21, %s2412_s22, %s2413_s23  }
  0x24   : > { %s171_s10 = scalar_lea.hbm %s3805_s0, %s2101_s4  ;;  %s164_s29 = scalar_lea.vmem [#allocation3], %s2100_s5 }
  0x25   : > { %s174_s1 = sshll.u32 %s164_s29, 4  ;;  %s172_s20 = sshll.u32 %s171_s10, 4  ;;  %s175_s1 = int_to_ptr.vmem [resolvable:$true] %s174_s1  ;;  %s173_s20 = int_to_ptr.hbm [resolvable:$true] %s172_s20 }
  0x26   : > { %s2414_s9 = smov 256   ;;  %s2415_s11 = smov 8  }
  0x27   : > { %2129 = dma.hbm_to_vmem [thread:$0]  (!%p2514_p0), %s173_s20, 8192, %s175_s1, %s161_s26, %s2414_s9, %s2411_s21, %s2415_s11  }
  0x28   : > { %s211_s14 = scalar_lea.hbm %s3807_s2, %s2405_s16  ;;  %s208_s17 = scalar_lea.vmem [#allocation8], %s2509_s28 }
  0x29   : > { %s215_s27 = sshll.u32 %s208_s17, 4  ;;  %s213_s12 = sshll.u32 %s211_s14, 4  ;;  %s216_s27 = int_to_ptr.vmem [resolvable:$true] %s215_s27  ;;  %s214_s12 = int_to_ptr.hbm [resolvable:$true] %s213_s12 }
  0x2a   : > { %2135 = dma.hbm_to_vmem [thread:$0]  (!%p2514_p0), %s214_s12, 16, %s216_s27, %s185_s19  }
  0x2b   : > { %224 = sbr.rel (%p2527_p3) target bundleno = 477 (0x1dd), region = 32 }
  0x30   : > { %s2549_s5 = sand.u32 1, %s2393_s13  }
  0x31   : > { %s2104_s1 = sshll.u32 %s2549_s5, 9  ;;  %s227_s20 = scalar_lea.sflag [#allocation4], %s2549_s5 }
  0x32   : > { %s2555_s26 = scalar_lea.vmem [#allocation3], %s2104_s1 }
  0x33   : > { %2376 = dma.done.wait (%p2491_p8), %s227_s20, 8192  }
  0x34   : > { %2378 = vsyncadd (%p2491_p8), %s227_s20, 4294959104  ;;  %s236_s12 = sand.u32 1, %s2471_s18   ;;  %s2117_s14 = smul.u32 12, %s2549_s5 }
  0x35   : > { %s237_s17 = scalar_lea.sflag [#allocation7], %s236_s12 }
  0x36   : > { %s2563_s27 = scalar_lea.vmem [#allocation6], %s2117_s14 }
  0x37   : > { %2380 = dma.done.wait (%p2491_p8), %s237_s17, 208  }
  0x38   : > { %2382 = vsyncadd (%p2491_p8), %s237_s17, 4294967088  ;;  %v2416_v0 = vmov 0.0   ;;  %s2588_s18 = scalar_lea.vmem [#allocation8], %s2549_s5  ;;  %v2655_v1 = vld [vmem:[%s2555_s26] sm:$0xff]  ;;  %v2659_v2 = vld [vmem:[%s2555_s26 + $0x8] sm:$0xff]  ;;  %s3007_s24 = scalar_lea.vmem [#allocation9], %s2104_s1 }
  0x39   : > { %284 = vst [vmem:[#allocation2] sm:$0xff] %v2416_v0  ;;  %v2663_v3 = vld [vmem:[%s2555_s26 + $0x10] sm:$0xff]  ;;  %v2667_v4 = vld [vmem:[%s2555_s26 + $0x18] sm:$0xff]  ;;  %v2671_v5 = vld [vmem:[%s2555_s26 + $0x20] sm:$0xff]  ;;  %s2113_s28 = sshll.u32 %s2401_s15, 3  ;;  %s1969_s21 = sshll.u32 %s3007_s24, 4  ;;  %s1970_s21 = int_to_ptr.vmem [resolvable:$true] %s1969_s21 }
  0x3a   : > { %285 = vst [vmem:[#allocation2 + $0x8] sm:$0xff] %v2416_v0  ;;  %v2675_v6 = vld [vmem:[%s2555_s26 + $0x28] sm:$0xff]  ;;  %v2679_v7 = vld [vmem:[%s2555_s26 + $0x30] sm:$0xff]  ;;  %v2683_v8 = vld [vmem:[%s2555_s26 + $0x38] sm:$0xff]  ;;  %s1968_s19 = scalar_lea.hbm %s3808_s3, %s2113_s28  ;;  %s1955_s4 = scalar_lea.sflag [#allocation5], %s2549_s5 }
  0x3b   : > { %286 = vst [vmem:[#allocation2 + $0x10] sm:$0x3] %v2416_v0  ;;  %v2687_v9 = vld [vmem:[%s2555_s26 + $0x40] sm:$0xff]  ;;  %v2691_v10 = vld [vmem:[%s2555_s26 + $0x48] sm:$0xff]  ;;  %v2695_v11 = vld [vmem:[%s2555_s26 + $0x50] sm:$0xff]  ;;  %s1971_s6 = sshll.u32 %s1968_s19, 4  ;;  %s1972_s6 = int_to_ptr.hbm [resolvable:$true] %s1971_s6 }
  0x3c   : > { %287 = vst [vmem:[#allocation2 + $0x1b0] sm:$0xff] %v2416_v0  ;;  %v2699_v12 = vld [vmem:[%s2555_s26 + $0x58] sm:$0xff]  ;;  %v2703_v13 = vld [vmem:[%s2555_s26 + $0x60] sm:$0xff]  ;;  %v2707_v14 = vld [vmem:[%s2555_s26 + $0x68] sm:$0xff]  ;;  %s2337_s7 = sshra.s32 %s1972_s6, 4  ;;  %s2343_s9 = scalar_lea.hbm %s3808_s3, 1024  ;;  %s2338_s7 = int_to_ptr.hbm [resolvable:$true] %s2337_s7 }
  0x3d   : > { %288 = vst [vmem:[#allocation2 + $0x1b8] sm:$0xff] %v2416_v0  ;;  %v2711_v15 = vld [vmem:[%s2555_s26 + $0x70] sm:$0xff]  ;;  %v384_v16 = vld [vmem:[%s2555_s26 + $0x78] sm:$0xff]  ;;  %v385_v17 = vld [vmem:[%s2555_s26 + $0x80] sm:$0xff]  ;;  %s2339_s8 = scalar_lea.hbm %s2338_s7, 512  ;;  %p2344_p7 = scmp.lt.s32.totalorder %s2338_s7, %s3808_s3 }
  0x3e   : > { %289 = vst [vmem:[#allocation2 + $0x1c0] sm:$0x3] %v2416_v0  ;;  %v386_v18 = vld [vmem:[%s2555_s26 + $0x88] sm:$0xff]  ;;  %v387_v19 = vld [vmem:[%s2555_s26 + $0x90] sm:$0xff]  ;;  %v388_v20 = vld [vmem:[%s2555_s26 + $0x98] sm:$0xff]  ;;  %p2340_p4 = scmp.ne.s32.totalorder %s2338_s7, %s2339_s8  ;;  %p2345_p8 = scmp.lt.s32.totalorder %s2343_s9, %s2339_s8 }
  0x3f   : > { %291 = vst [vmem:[#allocation2 + $0x198] sm:$0xff] %v2416_v0  ;;  %v389_v21 = vld [vmem:[%s2555_s26 + $0xa0] sm:$0xff]  ;;  %v390_v22 = vld [vmem:[%s2555_s26 + $0xa8] sm:$0xff]  ;;  %v391_v23 = vld [vmem:[%s2555_s26 + $0xb0] sm:$0xff] }
  0x40   : > { %292 = vst [vmem:[#allocation2 + $0x1a0] sm:$0xff] %v2416_v0  ;;  %v392_v24 = vld [vmem:[%s2555_s26 + $0xb8] sm:$0xff]  ;;  %v393_v25 = vld [vmem:[%s2555_s26 + $0xc0] sm:$0xff]  ;;  %v394_v26 = vld [vmem:[%s2555_s26 + $0xc8] sm:$0xff]  ;;  %p2341_p5 = pnand %p2340_p4, %p2495_p9  ;;  %p2346_p10 = por %p2345_p8, %p2344_p7 }
  0x41   : > { %293 = vst [vmem:[#allocation2 + $0x1a8] sm:$0x3] %v2416_v0  ;;  %v395_v27 = vld [vmem:[%s2555_s26 + $0xd0] sm:$0xff]  ;;  %v396_v28 = vld [vmem:[%s2555_s26 + $0xd8] sm:$0xff]  ;;  %v397_v29 = vld [vmem:[%s2555_s26 + $0xe0] sm:$0xff] }
  0x42   : > { %294 = vst [vmem:[#allocation2 + $0x348] sm:$0xff] %v2416_v0  ;;  %v398_v30 = vld [vmem:[%s2555_s26 + $0xe8] sm:$0xff]  ;;  %v2732_v31 = vld [vmem:[%s2555_s26 + $0x100] sm:$0xff]  ;;  %v2741_v34 = vld [vmem:[%s2555_s26 + $0x110] sm:$0xff]  ;;  %p2342_p6 = pneg %p2341_p5 }
  0x43   : > { %295 = vst [vmem:[#allocation2 + $0x350] sm:$0xff] %v2416_v0  ;;  %v2735_v32 = vld [vmem:[%s2555_s26 + $0x108] sm:$0xff]  ;;  %v2744_v35 = vld [vmem:[%s2555_s26 + $0x118] sm:$0xff]  ;;  %v2748_v38 = vld [vmem:[%s2588_s18] ss:$0 sm:$0xff] }
  0x44   : > { %296 = vst [vmem:[#allocation2 + $0x358] sm:$0x3] %v2416_v0  ;;  %v2738_v33 = vld [vmem:[%s2563_s27] ss:$0 sm:$0xff]  ;;  %v2751_v39 = vld [vmem:[%s2563_s27 + $0x1] ss:$0 sm:$0xff]  ;;  %p2347_p13 = pnand %p2346_p10, %p2342_p6 }
  0x45   : > { %297 = vst [vmem:[#allocation2] sm:$0x1] %v2416_v0  ;;  %v405_v41 = vld [vmem:[%s2555_s26 + $0x120] sm:$0xff]  ;;  %v406_v42 = vld [vmem:[%s2555_s26 + $0x128] sm:$0xff]  ;;  %v718_v44 = vmul.f32 0.0, %v2738_v33  ;;  %v407_v45 = vld [vmem:[%s2555_s26 + $0x130] sm:$0xff]  ;;  %v2772_v58 = vmul.f32 %v2751_v39, %v2655_v1  ;;  %v854_v59 = vmul.f32 %v2751_v39, %v2663_v3 }
  0x46   : > { %298 = vst [vmem:[#allocation2 + $0x18] sm:$0x1] %v2416_v0  ;;  %v570_v43 = vld [vmem:[#allocation2 + $0x1] sm:$0xff]  ;;  %v571_v50 = vld [vmem:[#allocation2 + $0x9] sm:$0xff]  ;;  %v408_v51 = vld [vmem:[%s2555_s26 + $0x138] sm:$0xff] }
  0x47   : > { %299 = vst [vmem:[#allocation2 + $0x30] sm:$0x1] %v2416_v0  ;;  %v642_v47 = vld [vmem:[#allocation2 + $0x2] sm:$0xff]  ;;  %v850_v49 = vmul.f32 %v2751_v39, %v570_v43 }
  0x48   : > { %300 = vst [vmem:[#allocation2 + $0x48] sm:$0x1] %v2416_v0  ;;  %v2765_v54 = vld [vmem:[%s2563_s27 + $0x2] ss:$0 sm:$0xff]  ;;  %v2777_v61 = vld [vmem:[%s2563_s27 + $0x4] ss:$0 sm:$0xff] }
  0x49   : > { %301 = vst [vmem:[#allocation2 + $0x60] sm:$0x1] %v2416_v0  ;;  %v409_v56 = vld [vmem:[%s2555_s26 + $0x140] sm:$0xff] }
  0x4a   : > { %302 = vst [vmem:[#allocation2 + $0x78] sm:$0x1] %v2416_v0 }
  0x4b   : > { %303 = vst [vmem:[#allocation2 + $0x90] sm:$0x1] %v2416_v0 }
  0x4c   : > { %304 = vst [vmem:[#allocation2 + $0xa8] sm:$0x1] %v2416_v0  ;;  %v498_v36 = vld [vmem:[#allocation2] sm:$0xff] }
  0x4d   : > { %305 = vst [vmem:[#allocation2 + $0xc0] sm:$0x1] %v2416_v0  ;;  %v717_v37 = vmul.f32 %v2738_v33, %v498_v36 }
  0x4e   : > { %306 = vst [vmem:[#allocation2 + $0xd8] sm:$0x1] %v2416_v0 }
  0x4f   : > { %307 = vst [vmem:[#allocation2 + $0xf0] sm:$0x1] %v2416_v0  ;;  %v784_v48 = vadd.f32 %v2748_v38, %v717_v37 }
  0x50   : > { %308 = vst [vmem:[#allocation2 + $0x108] sm:$0x1] %v2416_v0 }
  0x51   : > { %309 = vst [vmem:[#allocation2 + $0x120] sm:$0x1] %v2416_v0  ;;  %v914_v60 = vadd.f32 %v850_v49, %v784_v48  ;;  %v2830_v49 = vld [vmem:[%s2563_s27 + $0x9] ss:$0 sm:$0xff] }
  0x52   : > { %310 = vst [vmem:[#allocation2 + $0x138] sm:$0x1] %v2416_v0 }
  0x53   : > { %311 = vst [vmem:[#allocation2 + $0x150] sm:$0x1] %v2416_v0 }
  0x54   : > { %312 = vst [vmem:[#allocation2 + $0x168] sm:$0x1] %v2416_v0 }
  0x55   : > { %313 = vst [vmem:[#allocation2 + $0x180] sm:$0x1] %v2416_v0 }
  0x56   : > { %316 = vst [vmem:[#allocation2 + $0x1c8] sm:$0x1] %v2416_v0 }
  0x57   : > { %317 = vst [vmem:[#allocation2 + $0x1e0] sm:$0x1] %v2416_v0 }
  0x58   : > { %318 = vst [vmem:[#allocation2 + $0x1f8] sm:$0x1] %v2416_v0 }
  0x59   : > { %319 = vst [vmem:[#allocation2 + $0x210] sm:$0x1] %v2416_v0 }
  0x5a   : > { %320 = vst [vmem:[#allocation2 + $0x228] sm:$0x1] %v2416_v0 }
  0x5b   : > { %321 = vst [vmem:[#allocation2 + $0x240] sm:$0x1] %v2416_v0 }
  0x5c   : > { %322 = vst [vmem:[#allocation2 + $0x258] sm:$0x1] %v2416_v0 }
  0x5d   : > { %323 = vst [vmem:[#allocation2 + $0x270] sm:$0x1] %v2416_v0 }
  0x5e   : > { %324 = vst [vmem:[#allocation2 + $0x288] sm:$0x1] %v2416_v0 }
  0x5f   : > { %325 = vst [vmem:[#allocation2 + $0x2a0] sm:$0x1] %v2416_v0 }
  0x60   : > { %326 = vst [vmem:[#allocation2 + $0x2b8] sm:$0x1] %v2416_v0 }
  0x61   : > { %327 = vst [vmem:[#allocation2 + $0x2d0] sm:$0x1] %v2416_v0 }
  0x62   : > { %328 = vst [vmem:[#allocation2 + $0x2e8] sm:$0x1] %v2416_v0 }
  0x63   : > { %329 = vst [vmem:[#allocation2 + $0x300] sm:$0x1] %v2416_v0 }
  0x64   : > { %330 = vst [vmem:[#allocation2 + $0x318] sm:$0x1] %v2416_v0 }
  0x65   : > { %331 = vst [vmem:[#allocation2 + $0x330] sm:$0x1] %v2416_v0 }
  0x66   : > { %334 = vst [vmem:[#allocation2 + $0x29] sm:$0x1] %v2416_v0 }
  0x67   : > { %335 = vst [vmem:[#allocation2 + $0x41] sm:$0x1] %v2416_v0 }
  0x68   : > { %336 = vst [vmem:[#allocation2 + $0x59] sm:$0x1] %v2416_v0 }
  0x69   : > { %337 = vst [vmem:[#allocation2 + $0x71] sm:$0x1] %v2416_v0 }
  0x6a   : > { %338 = vst [vmem:[#allocation2 + $0x89] sm:$0x1] %v2416_v0 }
  0x6b   : > { %339 = vst [vmem:[#allocation2 + $0xa1] sm:$0x1] %v2416_v0 }
  0x6c   : > { %340 = vst [vmem:[#allocation2 + $0xb9] sm:$0x1] %v2416_v0 }
  0x6d   : > { %341 = vst [vmem:[#allocation2 + $0xd1] sm:$0x1] %v2416_v0 }
  0x6e   : > { %342 = vst [vmem:[#allocation2 + $0xe9] sm:$0x1] %v2416_v0 }
  0x6f   : > { %343 = vst [vmem:[#allocation2 + $0x101] sm:$0x1] %v2416_v0 }
  0x70   : > { %344 = vst [vmem:[#allocation2 + $0x119] sm:$0x1] %v2416_v0 }
  0x71   : > { %345 = vst [vmem:[#allocation2 + $0x131] sm:$0x1] %v2416_v0 }
  0x72   : > { %346 = vst [vmem:[#allocation2 + $0x149] sm:$0x1] %v2416_v0 }
  0x73   : > { %347 = vst [vmem:[#allocation2 + $0x161] sm:$0x1] %v2416_v0 }
  0x74   : > { %348 = vst [vmem:[#allocation2 + $0x179] sm:$0x1] %v2416_v0 }
  0x75   : > { %349 = vst [vmem:[#allocation2 + $0x191] sm:$0x1] %v2416_v0 }
  0x76   : > { %352 = vst [vmem:[#allocation2 + $0x1d9] sm:$0x1] %v2416_v0 }
  0x77   : > { %353 = vst [vmem:[#allocation2 + $0x1f1] sm:$0x1] %v2416_v0 }
  0x78   : > { %354 = vst [vmem:[#allocation2 + $0x209] sm:$0x1] %v2416_v0 }
  0x79   : > { %355 = vst [vmem:[#allocation2 + $0x221] sm:$0x1] %v2416_v0 }
  0x7a   : > { %356 = vst [vmem:[#allocation2 + $0x239] sm:$0x1] %v2416_v0 }
  0x7b   : > { %357 = vst [vmem:[#allocation2 + $0x251] sm:$0x1] %v2416_v0 }
  0x7c   : > { %358 = vst [vmem:[#allocation2 + $0x269] sm:$0x1] %v2416_v0 }
  0x7d   : > { %359 = vst [vmem:[#allocation2 + $0x281] sm:$0x1] %v2416_v0 }
  0x7e   : > { %360 = vst [vmem:[#allocation2 + $0x299] sm:$0x1] %v2416_v0 }
  0x7f   : > { %361 = vst [vmem:[#allocation2 + $0x2b1] sm:$0x1] %v2416_v0 }
  0x80   : > { %362 = vst [vmem:[#allocation2 + $0x2c9] sm:$0x1] %v2416_v0 }
  0x81   : > { %363 = vst [vmem:[#allocation2 + $0x2e1] sm:$0x1] %v2416_v0 }
  0x82   : > { %364 = vst [vmem:[#allocation2 + $0x2f9] sm:$0x1] %v2416_v0 }
  0x83   : > { %365 = vst [vmem:[#allocation2 + $0x311] sm:$0x1] %v2416_v0 }
  0x84   : > { %366 = vst [vmem:[#allocation2 + $0x329] sm:$0x1] %v2416_v0 }
  0x85   : > { %367 = vst [vmem:[#allocation2 + $0x341] sm:$0x1] %v2416_v0 }
  0x86   : > { %314 = vst [vmem:[#allocation2 + $0x198] sm:$0x1] %v2416_v0 }
  0x87   : > { %315 = vst [vmem:[#allocation2 + $0x1b0] sm:$0x1] %v2416_v0 }
  0x88   : > { %332 = vst [vmem:[#allocation2 + $0x348] sm:$0x1] %v2416_v0 }
  0x89   : > { %333 = vst [vmem:[#allocation2 + $0x11] sm:$0x1] %v2416_v0 }
  0x8a   : > { %350 = vst [vmem:[#allocation2 + $0x1a9] sm:$0x1] %v2416_v0 }
  0x8b   : > { %351 = vst [vmem:[#allocation2 + $0x1c1] sm:$0x1] %v2416_v0 }
  0x8c   : > { %368 = vst [vmem:[#allocation2 + $0x359] sm:$0x1] %v2416_v0  ;;  %v980_v0 = vmul.f32 %v2765_v54, %v642_v47 }
  0x8d   : > { %434 = vst [vmem:[#allocation2 + $0x19] sm:$0xff] %v2655_v1 }
  0x8e   : > { %435 = vst [vmem:[#allocation2 + $0x21] sm:$0xff] %v2659_v2  ;;  %v534_v40 = vld [vmem:[#allocation2 + $0x1b0] sm:$0xff] }
  0x8f   : > { %436 = vst [vmem:[#allocation2 + $0x31] sm:$0xff] %v2663_v3  ;;  %v749_v55 = vmul.f32 %v2738_v33, %v534_v40 }
  0x90   : > { %437 = vst [vmem:[#allocation2 + $0x39] sm:$0xff] %v2667_v4  ;;  %v643_v37 = vld [vmem:[#allocation2 + $0xa] sm:$0xff] }
  0x91   : > { %438 = vst [vmem:[#allocation2 + $0x49] sm:$0xff] %v2671_v5  ;;  %v2816_v40 = vadd.f32 %v2748_v38, %v749_v55 }
  0x92   : > { %439 = vst [vmem:[#allocation2 + $0x51] sm:$0xff] %v2675_v6 }
  0x93   : > { %440 = vst [vmem:[#allocation2 + $0x61] sm:$0xff] %v2679_v7 }
  0x94   : > { %3841 = vst [vmem:[#allocation19_spill] sm:$0xff] %v2691_v10  ;;  %v500_v52 = vld [vmem:[#allocation2 + $0x18] sm:$0xff] }
  0x95   : > { %441 = vst [vmem:[#allocation2 + $0x69] sm:$0xff] %v2683_v8  ;;  %v644_v57 = vld [vmem:[#allocation2 + $0x1a] sm:$0xff] }
  0x96   : > { %3842 = vst [vmem:[#allocation20_spill] sm:$0xff] %v2695_v11  ;;  %v502_v46 = vld [vmem:[#allocation2 + $0x30] sm:$0xff]  ;;  %v501_v36 = vld [vmem:[#allocation2 + $0x20] sm:$0xff] }
  0x97   : > { %442 = vst [vmem:[#allocation2 + $0x79] sm:$0xff] %v2687_v9  ;;  %v721_v53 = vmul.f32 %v2738_v33, %v502_v46  ;;  %v646_v62 = vld [vmem:[#allocation2 + $0x32] sm:$0xff] }
  0x98   : > { %3843 = vst [vmem:[#allocation21_spill] sm:$0xff] %v2699_v12  ;;  %v984_v43 = vmul.f32 %v2765_v54, %v646_v62 }
  0x99   : > { %443 = vst [vmem:[#allocation2 + $0x81] sm:$0xff] %v2691_v10  ;;  %v788_v63 = vadd.f32 %v2748_v38, %v721_v53 }
  0x9a   : > { %3844 = vst [vmem:[#allocation22_spill] sm:$0xff] %v2703_v13 }
  0x9b   : > { %444 = vst [vmem:[#allocation2 + $0x91] sm:$0xff] %v2695_v11 }
  0x9c   : > { %3845 = vst [vmem:[#allocation23_spill] sm:$0xff] %v2707_v14 }
  0x9d   : > { %445 = vst [vmem:[#allocation2 + $0x99] sm:$0xff] %v2699_v12  ;;  %v419_v12 = vld [vmem:[%s2555_s26 + $0x190] sm:$0xff] }
  0x9e   : > { %3846 = vst [vmem:[#allocation24_spill] sm:$0xff] %v2711_v15 }
  0x9f   : > { %446 = vst [vmem:[#allocation2 + $0xa9] sm:$0xff] %v2703_v13 }
  0xa0   : > { %447 = vst [vmem:[#allocation2 + $0xb1] sm:$0xff] %v2707_v14 }
  0xa1   : > { %448 = vst [vmem:[#allocation2 + $0xc1] sm:$0xff] %v2711_v15  ;;  %v2855_v15 = vmul.f32 %v2738_v33, %v501_v36 }
  0xa2   : > { %449 = vst [vmem:[#allocation2 + $0xc9] sm:$0xff] %v384_v16  ;;  %v2782_v16 = vld [vmem:[%s2563_s27 + $0x5] ss:$0 sm:$0xff] }
  0xa3   : > { %450 = vst [vmem:[#allocation2 + $0xd9] sm:$0xff] %v385_v17  ;;  %v2785_v17 = vld [vmem:[%s2563_s27 + $0x6] ss:$0 sm:$0xff] }
  0xa4   : > { %451 = vst [vmem:[#allocation2 + $0xe1] sm:$0xff] %v386_v18  ;;  %v2788_v18 = vadd.f32 %v2748_v38, %v718_v44  ;;  %v2821_v44 = vmul.f32 %v2777_v61, %v502_v46  ;;  %v1371_v48 = vmul.f32 %v2785_v17, %v644_v57  ;;  %v2837_v53 = vmul.f32 %v2785_v17, %v646_v62 }
  0xa5   : > { %452 = vst [vmem:[#allocation2 + $0xf1] sm:$0xff] %v387_v19  ;;  %v851_v19 = vmul.f32 %v2751_v39, %v571_v50 }
  0xa6   : > { %453 = vst [vmem:[#allocation2 + $0xf9] sm:$0xff] %v388_v20  ;;  %v410_v20 = vld [vmem:[%s2555_s26 + $0x148] sm:$0xff] }
  0xa7   : > { %454 = vst [vmem:[#allocation2 + $0x109] sm:$0xff] %v389_v21  ;;  %v2793_v21 = vmul.f32 %v2738_v33, %v500_v52 }
  0xa8   : > { %455 = vst [vmem:[#allocation2 + $0x111] sm:$0xff] %v390_v22  ;;  %v1111_v22 = vmul.f32 %v2777_v61, %v500_v52  ;;  %v413_v52 = vld [vmem:[%s2555_s26 + $0x160] sm:$0xff] }
  0xa9   : > { %456 = vst [vmem:[#allocation2 + $0x121] sm:$0xff] %v391_v23  ;;  %v2797_v23 = vld [vmem:[%s2563_s27 + $0x8] ss:$0 sm:$0xff] }
  0xaa   : > { %457 = vst [vmem:[#allocation2 + $0x129] sm:$0xff] %v392_v24  ;;  %v2799_v24 = vld [vmem:[#allocation2 + $0x38] sm:$0xff]  ;;  %v1502_v55 = vmul.f32 %v2797_v23, %v502_v46  ;;  %v415_v46 = vld [vmem:[%s2555_s26 + $0x170] sm:$0xff] }
  0xab   : > { %458 = vst [vmem:[#allocation2 + $0x139] sm:$0xff] %v393_v25  ;;  %v2803_v25 = vmul.f32 %v2751_v39, %v2659_v2  ;;  %v722_v50 = vmul.f32 %v2738_v33, %v2799_v24 }
  0xac   : > { %459 = vst [vmem:[#allocation2 + $0x141] sm:$0xff] %v394_v26  ;;  %v855_v26 = vmul.f32 %v2751_v39, %v2667_v4 }
  0xad   : > { %460 = vst [vmem:[#allocation2 + $0x151] sm:$0xff] %v395_v27  ;;  %v2808_v27 = vmul.f32 %v2765_v54, %v644_v57  ;;  %v1112_v57 = vmul.f32 %v2777_v61, %v501_v36  ;;  %v678_v36 = vld [vmem:[#allocation2 + $0x1b2] sm:$0xff] }
  0xae   : > { %461 = vst [vmem:[#allocation2 + $0x159] sm:$0xff] %v396_v28  ;;  %v1044_v28 = vadd.f32 %v980_v0, %v914_v60  ;;  %v981_v60 = vmul.f32 %v2765_v54, %v643_v37 }
  0xaf   : > { %462 = vst [vmem:[#allocation2 + $0x169] sm:$0xff] %v397_v29  ;;  %v1241_v29 = vmul.f32 %v2782_v16, %v2655_v1  ;;  %v412_v1 = vld [vmem:[%s2555_s26 + $0x158] sm:$0xff] }
  0xb0   : > { %463 = vst [vmem:[#allocation2 + $0x171] sm:$0xff] %v398_v30  ;;  %v2813_v30 = vld [vmem:[%s2563_s27 + $0xa] ss:$0 sm:$0xff]  ;;  %v1175_v47 = vadd.f32 %v1111_v22, %v1044_v28  ;;  %v789_v22 = vadd.f32 %v2748_v38, %v722_v50 }
  0xb1   : > { %466 = vst [vmem:[#allocation2 + $0x1c9] sm:$0xff] %v2732_v31 }
  0xb2   : > { %467 = vst [vmem:[#allocation2 + $0x1d1] sm:$0xff] %v2735_v32  ;;  %v1305_v0 = vadd.f32 %v1241_v29, %v1175_v47  ;;  %v1242_v29 = vmul.f32 %v2782_v16, %v2659_v2  ;;  %v2871_v2 = vmul.f32 %v2782_v16, %v2667_v4  ;;  %v919_v14 = vadd.f32 %v855_v26, %v789_v22 }
  0xb3   : > { %468 = vst [vmem:[#allocation2 + $0x1e1] sm:$0xff] %v2741_v34  ;;  %v1012_v26 = vmul.f32 %v2765_v54, %v678_v36 }
  0xb4   : > { %469 = vst [vmem:[#allocation2 + $0x1e9] sm:$0xff] %v2744_v35  ;;  %v1435_v47 = vadd.f32 %v1371_v48, %v1305_v0 }
  0xb5   : > { %470 = vst [vmem:[#allocation2 + $0x1f9] sm:$0xff] %v405_v41  ;;  %v411_v41 = vld [vmem:[%s2555_s26 + $0x150] sm:$0xff] }
  0xb6   : > { %471 = vst [vmem:[#allocation2 + $0x201] sm:$0xff] %v406_v42  ;;  %v918_v42 = vadd.f32 %v854_v59, %v788_v63  ;;  %v647_v59 = vld [vmem:[#allocation2 + $0x3a] sm:$0xff]  ;;  %v414_v63 = vld [vmem:[%s2555_s26 + $0x168] sm:$0xff]  ;;  %v1566_v0 = vadd.f32 %v1502_v55, %v1435_v47  ;;  %v1503_v47 = vmul.f32 %v2797_v23, %v2799_v24 }
  0xb7   : > { %472 = vst [vmem:[#allocation2 + $0x211] sm:$0xff] %v407_v45  ;;  %v2825_v45 = vmul.f32 %v2782_v16, %v2663_v3  ;;  %v2878_v13 = vmul.f32 %v2785_v17, %v647_v59  ;;  %v420_v55 = vld [vmem:[%s2555_s26 + $0x198] sm:$0xff] }
  0xb8   : > { %473 = vst [vmem:[#allocation2 + $0x219] sm:$0xff] %v408_v51  ;;  %v915_v51 = vadd.f32 %v851_v19, %v2788_v18  ;;  %v1632_v19 = vmul.f32 %v2830_v49, %v2663_v3  ;;  %v2852_v37 = vadd.f32 %v984_v43, %v918_v42  ;;  %v606_v3 = vld [vmem:[#allocation2 + $0x1b1] sm:$0xff]  ;;  %v2866_v42 = vmul.f32 %v2777_v61, %v2799_v24  ;;  %v417_v43 = vld [vmem:[%s2555_s26 + $0x180] sm:$0xff] }
  0xb9   : > { %474 = vst [vmem:[#allocation2 + $0x229] sm:$0xff] %v409_v56  ;;  %v645_v56 = vld [vmem:[#allocation2 + $0x22] sm:$0xff]  ;;  %v1763_v24 = vmul.f32 %v2813_v30, %v647_v59 }
  0xba   : > { %475 = vst [vmem:[#allocation2 + $0x231] sm:$0xff] %v410_v20  ;;  %v2846_v20 = vmul.f32 %v2813_v30, %v646_v62  ;;  %v2849_v28 = vld [vmem:[#allocation2 + $0x1e0] sm:$0xff]  ;;  %v416_v62 = vld [vmem:[%s2555_s26 + $0x178] sm:$0xff]  ;;  %v2861_v50 = vmul.f32 %v2765_v54, %v645_v56  ;;  %v1372_v48 = vmul.f32 %v2785_v17, %v645_v56  ;;  %v1696_v22 = vadd.f32 %v1632_v19, %v1566_v0  ;;  %v422_v19 = vld [vmem:[%s2555_s26 + $0x1a8] sm:$0xff] }
  0xbb   : > { %476 = vst [vmem:[#allocation2 + $0x241] sm:$0xff] %v411_v41  ;;  %v1045_v41 = vadd.f32 %v981_v60, %v915_v51  ;;  %v418_v60 = vld [vmem:[%s2555_s26 + $0x188] sm:$0xff]  ;;  %v423_v0 = vld [vmem:[%s2555_s26 + $0x1b0] sm:$0xff] }
  0xbc   : > { %477 = vst [vmem:[#allocation2 + $0x249] sm:$0xff] %v412_v1  ;;  %v985_v1 = vmul.f32 %v2765_v54, %v647_v59 }
  0xbd   : > { %478 = vst [vmem:[#allocation2 + $0x259] sm:$0xff] %v413_v52  ;;  %v1176_v51 = vadd.f32 %v1112_v57, %v1045_v41  ;;  %v753_v52 = vmul.f32 %v2738_v33, %v2849_v28  ;;  %v2880_v57 = vld [vmem:[#allocation2 + $0x1e2] sm:$0xff]  ;;  %v882_v41 = vmul.f32 %v2751_v39, %v606_v3  ;;  %v1633_v3 = vmul.f32 %v2830_v49, %v2667_v4 }
  0xbe   : > { %479 = vst [vmem:[#allocation2 + $0x261] sm:$0xff] %v414_v63  ;;  %v536_v63 = vld [vmem:[#allocation2 + $0x1c8] sm:$0xff]  ;;  %v1016_v36 = vmul.f32 %v2765_v54, %v2880_v57 }
  0xbf   : > { %480 = vst [vmem:[#allocation2 + $0x271] sm:$0xff] %v415_v46  ;;  %v1306_v56 = vadd.f32 %v1242_v29, %v1176_v51  ;;  %v820_v11 = vadd.f32 %v2748_v38, %v753_v52  ;;  %v886_v46 = vmul.f32 %v2751_v39, %v2741_v34  ;;  %v421_v29 = vld [vmem:[%s2555_s26 + $0x1a0] sm:$0xff]  ;;  %v680_v52 = vld [vmem:[#allocation2 + $0x1ca] sm:$0xff]  ;;  %v2901_v4 = vmul.f32 %v2738_v33, %v536_v63 }
  0xc0   : > { %481 = vst [vmem:[#allocation2 + $0x279] sm:$0xff] %v416_v62  ;;  %v946_v62 = vadd.f32 %v882_v41, %v2816_v40  ;;  %v2908_v41 = vadd.f32 %v985_v1, %v919_v14  ;;  %v2925_v14 = vmul.f32 %v2777_v61, %v2849_v28 }
  0xc1   : > { %482 = vst [vmem:[#allocation2 + $0x289] sm:$0xff] %v417_v43  ;;  %v1436_v51 = vadd.f32 %v1372_v48, %v1306_v56  ;;  %v950_v10 = vadd.f32 %v886_v46, %v820_v11  ;;  %v1143_v43 = vmul.f32 %v2777_v61, %v536_v63  ;;  %v2905_v48 = vld [vmem:[#allocation2 + $0x1e8] sm:$0xff]  ;;  %v607_v11 = vld [vmem:[#allocation2 + $0x1b9] sm:$0xff]  ;;  %v2912_v56 = vmul.f32 %v2751_v39, %v2732_v31 }
  0xc2   : > { %483 = vst [vmem:[#allocation2 + $0x291] sm:$0xff] %v418_v60  ;;  %v1076_v40 = vadd.f32 %v1012_v26, %v946_v62  ;;  %v1273_v60 = vmul.f32 %v2782_v16, %v2732_v31  ;;  %v679_v63 = vld [vmem:[#allocation2 + $0x1ba] sm:$0xff]  ;;  %v2918_v26 = vadd.f32 %v2846_v20, %v1696_v22  ;;  %v2921_v62 = vmul.f32 %v2765_v54, %v680_v52 }
  0xc3   : > { %484 = vst [vmem:[#allocation2 + $0x2a1] sm:$0xff] %v419_v12  ;;  %v1567_v12 = vadd.f32 %v1503_v47, %v1436_v51  ;;  %v2914_v59 = vadd.f32 %v1016_v36, %v950_v10  ;;  %v424_v46 = vld [vmem:[%s2555_s26 + $0x1b8] sm:$0xff]  ;;  %v425_v31 = vld [vmem:[%s2555_s26 + $0x1c0] sm:$0xff]  ;;  %v2930_v10 = vmul.f32 %v2782_v16, %v2741_v34  ;;  %v537_v47 = vld [vmem:[#allocation2 + $0x1d0] sm:$0xff]  ;;  %v754_v20 = vmul.f32 %v2738_v33, %v2905_v48 }
  0xc4   : > { %485 = vst [vmem:[#allocation2 + $0x2a9] sm:$0xff] %v420_v55  ;;  %v1207_v1 = vadd.f32 %v1143_v43, %v1076_v40  ;;  %v1403_v55 = vmul.f32 %v2785_v17, %v680_v52  ;;  %v883_v22 = vmul.f32 %v2751_v39, %v607_v11  ;;  %v683_v43 = vld [vmem:[#allocation2 + $0x1ea] sm:$0xff]  ;;  %v1013_v40 = vmul.f32 %v2765_v54, %v679_v63 }
  0xc5   : > { %3847 = vst [vmem:[#allocation25_spill] sm:$0xff] %v2914_v59  ;;  %v1697_v51 = vadd.f32 %v1633_v3, %v1567_v12  ;;  %v427_v52 = vld [vmem:[%s2555_s26 + $0x1d0] sm:$0xff]  ;;  %v2943_v59 = vmul.f32 %v2785_v17, %v2880_v57  ;;  %v1534_v11 = vmul.f32 %v2797_v23, %v2849_v28  ;;  %v1664_v63 = vmul.f32 %v2830_v49, %v2741_v34  ;;  %v429_v28 = vld [vmem:[%s2555_s26 + $0x1e0] sm:$0xff]  ;;  %v430_v34 = vld [vmem:[%s2555_s26 + $0x1e8] sm:$0xff] }
  0xc6   : > { %486 = vst [vmem:[#allocation2 + $0x2b9] sm:$0xff] %v421_v29  ;;  %v426_v29 = vld [vmem:[%s2555_s26 + $0x1c8] sm:$0xff]  ;;  %v1337_v36 = vadd.f32 %v1273_v60, %v1207_v1  ;;  %v947_v3 = vadd.f32 %v883_v22, %v2788_v18  ;;  %v428_v60 = vld [vmem:[%s2555_s26 + $0x1d8] sm:$0xff] }
  0xc7   : > { %487 = vst [vmem:[#allocation2 + $0x2c1] sm:$0xff] %v422_v19  ;;  %v887_v19 = vmul.f32 %v2751_v39, %v2744_v35  ;;  %v681_v1 = vld [vmem:[#allocation2 + $0x1d2] sm:$0xff]  ;;  %v1827_v22 = vadd.f32 %v1763_v24, %v1697_v51 }
  0xc8   : > { %3848 = vst [vmem:[#allocation26_spill] sm:$0xff] %v2930_v10  ;;  %v1467_v12 = vadd.f32 %v1403_v55, %v1337_v36  ;;  %v1077_v18 = vadd.f32 %v1013_v40, %v947_v3  ;;  %v504_v55 = vld [vmem:[#allocation2 + $0x48] sm:$0xff]  ;;  %v2969_v40 = vmul.f32 %v2765_v54, %v681_v1  ;;  %v400_v51 = vld [vmem:[%s2555_s26 + $0xf8] sm:$0xff]  ;;  %v786_v3 = vadd.f32 %v2748_v38, %v2793_v21 }
  0xc9   : > { %488 = vst [vmem:[#allocation2 + $0x2d1] sm:$0xff] %v423_v0  ;;  %v821_v0 = vadd.f32 %v2748_v38, %v754_v20  ;;  %v1017_v20 = vmul.f32 %v2765_v54, %v683_v43 }
  0xca   : > { %489 = vst [vmem:[#allocation2 + $0x2d9] sm:$0xff] %v424_v46  ;;  %v1794_v46 = vmul.f32 %v2813_v30, %v2880_v57  ;;  %v1598_v36 = vadd.f32 %v1534_v11, %v1467_v12  ;;  %v2961_v57 = vmul.f32 %v2738_v33, %v537_v47 }
  0xcb   : > { %3849 = vst [vmem:[#allocation27_spill] sm:$0xff] %v2943_v59  ;;  %v1144_v59 = vmul.f32 %v2777_v61, %v537_v47  ;;  %v951_v10 = vadd.f32 %v887_v19, %v821_v0  ;;  %v399_v19 = vld [vmem:[%s2555_s26 + $0xf0] sm:$0xff] }
  0xcc   : > { %490 = vst [vmem:[#allocation2 + $0x2e9] sm:$0xff] %v425_v31  ;;  %v1274_v31 = vmul.f32 %v2782_v16, %v2735_v32  ;;  %v648_v47 = vld [vmem:[#allocation2 + $0x4a] sm:$0xff]  ;;  %v1728_v11 = vadd.f32 %v1664_v63, %v1598_v36  ;;  %v1795_v36 = vmul.f32 %v2813_v30, %v683_v43  ;;  %v649_v43 = vld [vmem:[#allocation2 + $0x52] sm:$0xff] }
  0xcd   : > { %491 = vst [vmem:[#allocation2 + $0x2f1] sm:$0xff] %v426_v29  ;;  %v2965_v29 = vmul.f32 %v2751_v39, %v2735_v32  ;;  %v2971_v0 = vadd.f32 %v1017_v20, %v951_v10  ;;  %v1208_v24 = vadd.f32 %v1144_v59, %v1077_v18  ;;  %v723_v32 = vmul.f32 %v2738_v33, %v504_v55  ;;  %v431_v10 = vld [vmem:[%s2555_s26 + $0x1f0] sm:$0xff]  ;;  %v432_v18 = vld [vmem:[%s2555_s26 + $0x1f8] sm:$0xff] }
  0xce   : > { %492 = vst [vmem:[#allocation2 + $0x301] sm:$0xff] %v427_v52  ;;  %v2975_v52 = vmul.f32 %v2777_v61, %v2905_v48  ;;  %v1404_v20 = vmul.f32 %v2785_v17, %v681_v1  ;;  %v1535_v59 = vmul.f32 %v2797_v23, %v2905_v48  ;;  %v505_v63 = vld [vmem:[#allocation2 + $0x50] sm:$0xff]  ;;  %v1858_v1 = vadd.f32 %v1794_v46, %v1728_v11 }
  0xcf   : > { %493 = vst [vmem:[#allocation2 + $0x309] sm:$0xff] %v428_v60  ;;  %v856_v60 = vmul.f32 %v2751_v39, %v2671_v5  ;;  %v1338_v12 = vadd.f32 %v1274_v31, %v1208_v24  ;;  %v790_v21 = vadd.f32 %v2748_v38, %v723_v32  ;;  %v1115_v48 = vmul.f32 %v2777_v61, %v504_v55 }
  0xd0   : > { %3850 = vst [vmem:[#allocation28_spill] sm:$0xff] %v2971_v0  ;;  %v916_v0 = vadd.f32 %v2772_v58, %v786_v3  ;;  %v724_v32 = vmul.f32 %v2738_v33, %v505_v63  ;;  %v787_v58 = vadd.f32 %v2748_v38, %v2855_v15  ;;  %v1375_v46 = vmul.f32 %v2785_v17, %v648_v47 }
  0xd1   : > { %494 = vst [vmem:[#allocation2 + $0x319] sm:$0xff] %v429_v28  ;;  %v1665_v28 = vmul.f32 %v2830_v49, %v2744_v35  ;;  %v1468_v31 = vadd.f32 %v1404_v20, %v1338_v12  ;;  %v1245_v35 = vmul.f32 %v2782_v16, %v2671_v5  ;;  %v1504_v11 = vmul.f32 %v2797_v23, %v504_v55 }
  0xd2   : > { %495 = vst [vmem:[#allocation2 + $0x321] sm:$0xff] %v430_v34  ;;  %v986_v34 = vmul.f32 %v2765_v54, %v648_v47  ;;  %v1046_v24 = vadd.f32 %v2808_v27, %v916_v0  ;;  %v857_v3 = vmul.f32 %v2751_v39, %v2675_v6  ;;  %v1634_v15 = vmul.f32 %v2830_v49, %v2671_v5 }
  0xd3   : > { %464 = vst [vmem:[#allocation2 + $0x181] sm:$0xff] %v399_v19  ;;  %v920_v19 = vadd.f32 %v856_v60, %v790_v21  ;;  %v791_v0 = vadd.f32 %v2748_v38, %v724_v32  ;;  %v917_v55 = vadd.f32 %v2803_v25, %v787_v58  ;;  %v506_v60 = vld [vmem:[#allocation2 + $0x60] sm:$0xff]  ;;  %v1764_v12 = vmul.f32 %v2813_v30, %v648_v47  ;;  %v507_v32 = vld [vmem:[#allocation2 + $0x68] sm:$0xff] }
  0xd4   : > { %465 = vst [vmem:[#allocation2 + $0x189] sm:$0xff] %v400_v51  ;;  %v1599_v51 = vadd.f32 %v1535_v59, %v1468_v31  ;;  %v1177_v27 = vadd.f32 %v2821_v44, %v1046_v24  ;;  %v987_v20 = vmul.f32 %v2765_v54, %v649_v43  ;;  %v1116_v59 = vmul.f32 %v2777_v61, %v505_v63 }
  0xd5   : > { %496 = vst [vmem:[#allocation2 + $0x331] sm:$0xff] %v431_v10  ;;  %v1047_v5 = vadd.f32 %v2861_v50, %v917_v55  ;;  %v1246_v25 = vmul.f32 %v2782_v16, %v2675_v6  ;;  %v858_v47 = vmul.f32 %v2751_v39, %v2679_v7  ;;  %v1635_v50 = vmul.f32 %v2830_v49, %v2675_v6  ;;  %v651_v55 = vld [vmem:[#allocation2 + $0x6a] sm:$0xff] }
  0xd6   : > { %497 = vst [vmem:[#allocation2 + $0x339] sm:$0xff] %v432_v18  ;;  %v1729_v10 = vadd.f32 %v1665_v28, %v1599_v51  ;;  %v1307_v44 = vadd.f32 %v2825_v45, %v1177_v27  ;;  %v921_v18 = vadd.f32 %v857_v3, %v791_v0  ;;  %v725_v28 = vmul.f32 %v2738_v33, %v506_v60 }
  0xd7   : > { %1890 = vst [vmem:[%s3007_s24] sm:$0xff] %v2918_v26  ;;  %v1050_v26 = vadd.f32 %v986_v34, %v920_v19  ;;  %v1376_v34 = vmul.f32 %v2785_v17, %v649_v43  ;;  %v1505_v45 = vmul.f32 %v2797_v23, %v505_v63  ;;  %v1179_v24 = vadd.f32 %v1115_v48, %v2852_v37 }
  0xd8   : > { %1891 = vst [vmem:[%s3007_s24 + $0x8] sm:$0xff] %v1827_v22  ;;  %v1859_v21 = vadd.f32 %v1795_v36, %v1729_v10  ;;  %v650_v22 = vld [vmem:[#allocation2 + $0x62] sm:$0xff]  ;;  %v1437_v31 = vadd.f32 %v2837_v53, %v1307_v44  ;;  %v1765_v36 = vmul.f32 %v2813_v30, %v649_v43  ;;  %v792_v19 = vadd.f32 %v2748_v38, %v725_v28 }
  0xd9   : > { %1922 = vst [vmem:[%s3007_s24 + $0x100] sm:$0xff] %v1858_v1  ;;  %v1178_v1 = vadd.f32 %v2866_v42, %v1047_v5  ;;  %v1051_v51 = vadd.f32 %v987_v20, %v921_v18  ;;  %v988_v42 = vmul.f32 %v2765_v54, %v650_v22  ;;  %v1117_v63 = vmul.f32 %v2777_v61, %v506_v60  ;;  %v508_v18 = vld [vmem:[#allocation2 + $0x78] sm:$0xff] }
  0xda   : > { %1923 = vst [vmem:[%s3007_s24 + $0x108] sm:$0xff] %v1859_v21  ;;  %v1568_v58 = vadd.f32 %v1504_v11, %v1437_v31  ;;  %v922_v3 = vadd.f32 %v858_v47, %v792_v19  ;;  %v1247_v27 = vmul.f32 %v2782_v16, %v2679_v7  ;;  %v1309_v6 = vadd.f32 %v1245_v35, %v1179_v24 }
  0xdb   : > { %v1308_v53 = vadd.f32 %v2871_v2, %v1178_v1  ;;  %v726_v37 = vmul.f32 %v2738_v33, %v507_v32  ;;  %v859_v48 = vmul.f32 %v2751_v39, %v2683_v8  ;;  %v1377_v2 = vmul.f32 %v2785_v17, %v650_v22 }
  0xdc   : > { %v1698_v0 = vadd.f32 %v1634_v15, %v1568_v58  ;;  %v1439_v11 = vadd.f32 %v1375_v46, %v1309_v6  ;;  %v1506_v10 = vmul.f32 %v2797_v23, %v506_v60  ;;  %v1636_v20 = vmul.f32 %v2830_v49, %v2679_v7 }
  0xdd   : > { %v1438_v43 = vadd.f32 %v2878_v13, %v1308_v53  ;;  %v793_v15 = vadd.f32 %v2748_v38, %v726_v37  ;;  %v1180_v13 = vadd.f32 %v1116_v59, %v2908_v41  ;;  %v3053_v5 = vadd.f32 %v988_v42, %v922_v3  ;;  %v652_v41 = vld [vmem:[#allocation2 + $0x7a] sm:$0xff] }
  0xde   : > { %v1828_v44 = vadd.f32 %v1764_v12, %v1698_v0  ;;  %v1570_v21 = vadd.f32 %v1506_v10, %v1439_v11  ;;  %v1766_v28 = vmul.f32 %v2813_v30, %v650_v22  ;;  %v989_v47 = vmul.f32 %v2765_v54, %v651_v55  ;;  %v509_v3 = vld [vmem:[#allocation2 + $0x80] sm:$0xff] }
  0xdf   : > { %v1569_v35 = vadd.f32 %v1505_v45, %v1438_v43  ;;  %v923_v60 = vadd.f32 %v859_v48, %v793_v15  ;;  %v1118_v31 = vmul.f32 %v2777_v61, %v507_v32  ;;  %v1310_v7 = vadd.f32 %v1246_v25, %v1180_v13  ;;  %v653_v48 = vld [vmem:[#allocation2 + $0x82] sm:$0xff]  ;;  %v3851_v10 = vld [vmem:[#allocation19_spill] sm:$0xff]  ;;  %v510_v13 = vld [vmem:[#allocation2 + $0x90] sm:$0xff] }
  0xe0   : > { %1892 = vst [vmem:[%s3007_s24 + $0x10] sm:$0xff] %v1828_v44  ;;  %v1700_v12 = vadd.f32 %v1636_v20, %v1570_v21  ;;  %v1248_v1 = vmul.f32 %v2782_v16, %v2683_v8  ;;  %v727_v59 = vmul.f32 %v2738_v33, %v508_v18  ;;  %v860_v22 = vmul.f32 %v2751_v39, %v2687_v9 }
  0xe1   : > { %v1699_v46 = vadd.f32 %v1635_v50, %v1569_v35  ;;  %v1440_v19 = vadd.f32 %v1376_v34, %v1310_v7  ;;  %v1507_v50 = vmul.f32 %v2797_v23, %v507_v32  ;;  %v1637_v24 = vmul.f32 %v2830_v49, %v2683_v8 }
  0xe2   : > { %v1830_v58 = vadd.f32 %v1766_v28, %v1700_v12  ;;  %v1378_v25 = vmul.f32 %v2785_v17, %v651_v55  ;;  %v794_v53 = vadd.f32 %v2748_v38, %v727_v59  ;;  %v1181_v42 = vadd.f32 %v1117_v63, %v1050_v26 }
  0xe3   : > { %v1829_v45 = vadd.f32 %v1765_v36, %v1699_v46  ;;  %v1053_v6 = vadd.f32 %v989_v47, %v923_v60  ;;  %v1571_v0 = vadd.f32 %v1507_v50, %v1440_v19  ;;  %v1767_v43 = vmul.f32 %v2813_v30, %v651_v55 }
  0xe4   : > { %v990_v36 = vmul.f32 %v2765_v54, %v652_v41  ;;  %1894 = vst [vmem:[%s3007_s24 + $0x20] sm:$0xff] %v1830_v58  ;;  %v924_v34 = vadd.f32 %v860_v22, %v794_v53  ;;  %v1119_v32 = vmul.f32 %v2777_v61, %v508_v18  ;;  %v1249_v8 = vmul.f32 %v2782_v16, %v2687_v9  ;;  %v511_v53 = vld [vmem:[#allocation2 + $0x98] sm:$0xff] }
  0xe5   : > { %1893 = vst [vmem:[%s3007_s24 + $0x18] sm:$0xff] %v1829_v45  ;;  %v1311_v37 = vadd.f32 %v1247_v27, %v1181_v42  ;;  %v1701_v11 = vadd.f32 %v1637_v24, %v1571_v0  ;;  %v1379_v26 = vmul.f32 %v2785_v17, %v652_v41  ;;  %v728_v63 = vmul.f32 %v2738_v33, %v509_v3 }
  0xe6   : > { %v861_v55 = vmul.f32 %v2751_v39, %v3851_v10  ;;  %v1508_v44 = vmul.f32 %v2797_v23, %v508_v18  ;;  %v1638_v35 = vmul.f32 %v2830_v49, %v2687_v9  ;;  %v1182_v15 = vadd.f32 %v1118_v31, %v1051_v51  ;;  %v654_v9 = vld [vmem:[#allocation2 + $0x92] sm:$0xff]  ;;  %v3852_v31 = vld [vmem:[#allocation20_spill] sm:$0xff] }
  0xe7   : > { %v1441_v20 = vadd.f32 %v1377_v2, %v1311_v37  ;;  %v1831_v21 = vadd.f32 %v1767_v43, %v1701_v11  ;;  %v1768_v27 = vmul.f32 %v2813_v30, %v652_v41  ;;  %v795_v28 = vadd.f32 %v2748_v38, %v728_v63  ;;  %v655_v11 = vld [vmem:[#allocation2 + $0x9a] sm:$0xff] }
  0xe8   : > { %v991_v47 = vmul.f32 %v2765_v54, %v653_v48  ;;  %v1054_v46 = vadd.f32 %v990_v36, %v924_v34  ;;  %v1120_v7 = vmul.f32 %v2777_v61, %v509_v3  ;;  %v1312_v12 = vadd.f32 %v1248_v1, %v1182_v15  ;;  %v512_v15 = vld [vmem:[#allocation2 + $0xa8] sm:$0xff] }
  0xe9   : > { %v1572_v60 = vadd.f32 %v1508_v44, %v1441_v20  ;;  %1895 = vst [vmem:[%s3007_s24 + $0x28] sm:$0xff] %v1831_v21  ;;  %v925_v2 = vadd.f32 %v861_v55, %v795_v28  ;;  %v1250_v18 = vmul.f32 %v2782_v16, %v3851_v10  ;;  %v729_v51 = vmul.f32 %v2738_v33, %v510_v13 }
  0xea   : > { %v862_v41 = vmul.f32 %v2751_v39, %v3852_v31  ;;  %v1442_v22 = vadd.f32 %v1378_v25, %v1312_v12  ;;  %v1509_v45 = vmul.f32 %v2797_v23, %v509_v3  ;;  %v1639_v19 = vmul.f32 %v2830_v49, %v3851_v10 }
  0xeb   : > { %v1702_v59 = vadd.f32 %v1638_v35, %v1572_v60  ;;  %v1380_v1 = vmul.f32 %v2785_v17, %v653_v48  ;;  %v1769_v50 = vmul.f32 %v2813_v30, %v653_v48  ;;  %v796_v24 = vadd.f32 %v2748_v38, %v729_v51  ;;  %v656_v51 = vld [vmem:[#allocation2 + $0xaa] sm:$0xff] }
  0xec   : > { %v1183_v58 = vadd.f32 %v1119_v32, %v3053_v5  ;;  %v1573_v0 = vadd.f32 %v1509_v45, %v1442_v22  ;;  %v992_v43 = vmul.f32 %v2765_v54, %v654_v9  ;;  %v1121_v25 = vmul.f32 %v2777_v61, %v510_v13  ;;  %v3853_v32 = vld [vmem:[#allocation21_spill] sm:$0xff] }
  0xed   : > { %v1832_v42 = vadd.f32 %v1768_v27, %v1702_v59  ;;  %v1055_v3 = vadd.f32 %v991_v47, %v925_v2  ;;  %v926_v36 = vadd.f32 %v862_v41, %v796_v24  ;;  %v1251_v34 = vmul.f32 %v2782_v16, %v3852_v31  ;;  %v513_v24 = vld [vmem:[#allocation2 + $0xb0] sm:$0xff] }
  0xee   : > { %v1313_v37 = vadd.f32 %v1249_v8, %v1183_v58  ;;  %v1703_v48 = vadd.f32 %v1639_v19, %v1573_v0  ;;  %v1381_v63 = vmul.f32 %v2785_v17, %v654_v9  ;;  %v730_v5 = vmul.f32 %v2738_v33, %v511_v53 }
  0xef   : > { %1896 = vst [vmem:[%s3007_s24 + $0x30] sm:$0xff] %v1832_v42  ;;  %v863_v10 = vmul.f32 %v2751_v39, %v3853_v32  ;;  %v1510_v20 = vmul.f32 %v2797_v23, %v510_v13  ;;  %v1640_v44 = vmul.f32 %v2830_v49, %v3852_v31  ;;  %v1184_v35 = vadd.f32 %v1120_v7, %v1053_v6  ;;  %v3854_v7 = vld [vmem:[#allocation22_spill] sm:$0xff] }
  0xf0   : > { %v1443_v55 = vadd.f32 %v1379_v26, %v1313_v37  ;;  %v1833_v8 = vadd.f32 %v1769_v50, %v1703_v48  ;;  %v1770_v21 = vmul.f32 %v2813_v30, %v654_v9  ;;  %v797_v27 = vadd.f32 %v2748_v38, %v730_v5  ;;  %v657_v48 = vld [vmem:[#allocation2 + $0xb2] sm:$0xff] }
  0xf1   : > { %v993_v28 = vmul.f32 %v2765_v54, %v655_v11  ;;  %v1056_v47 = vadd.f32 %v992_v43, %v926_v36  ;;  %v1122_v12 = vmul.f32 %v2777_v61, %v511_v53  ;;  %v1314_v2 = vadd.f32 %v1250_v18, %v1184_v35  ;;  %v514_v35 = vld [vmem:[#allocation2 + $0xc0] sm:$0xff] }
  0xf2   : > { %v1574_v60 = vadd.f32 %v1510_v20, %v1443_v55  ;;  %1897 = vst [vmem:[%s3007_s24 + $0x38] sm:$0xff] %v1833_v8  ;;  %v927_v26 = vadd.f32 %v863_v10, %v797_v27  ;;  %v1252_v13 = vmul.f32 %v2782_v16, %v3853_v32  ;;  %v731_v6 = vmul.f32 %v2738_v33, %v512_v15 }
  0xf3   : > { %v864_v9 = vmul.f32 %v2751_v39, %v3854_v7  ;;  %v1444_v41 = vadd.f32 %v1380_v1, %v1314_v2  ;;  %v1511_v59 = vmul.f32 %v2797_v23, %v511_v53  ;;  %v1641_v22 = vmul.f32 %v2830_v49, %v3853_v32 }
  0xf4   : > { %v1704_v31 = vadd.f32 %v1640_v44, %v1574_v60  ;;  %v1382_v18 = vmul.f32 %v2785_v17, %v655_v11  ;;  %v1771_v45 = vmul.f32 %v2813_v30, %v655_v11  ;;  %v798_v19 = vadd.f32 %v2748_v38, %v731_v6  ;;  %v658_v6 = vld [vmem:[#allocation2 + $0xc2] sm:$0xff] }
  0xf5   : > { %v1185_v50 = vadd.f32 %v1121_v25, %v1054_v46  ;;  %v1575_v42 = vadd.f32 %v1511_v59, %v1444_v41  ;;  %v994_v0 = vmul.f32 %v2765_v54, %v656_v51  ;;  %v1123_v1 = vmul.f32 %v2777_v61, %v512_v15  ;;  %v3855_v25 = vld [vmem:[#allocation23_spill] sm:$0xff] }
  0xf6   : > { %v1834_v58 = vadd.f32 %v1770_v21, %v1704_v31  ;;  %v1057_v43 = vadd.f32 %v993_v28, %v927_v26  ;;  %v928_v53 = vadd.f32 %v864_v9, %v798_v19  ;;  %v1253_v36 = vmul.f32 %v2782_v16, %v3854_v7  ;;  %v515_v19 = vld [vmem:[#allocation2 + $0xc8] sm:$0xff] }
  0xf7   : > { %v1315_v37 = vadd.f32 %v1251_v34, %v1185_v50  ;;  %v1705_v5 = vadd.f32 %v1641_v22, %v1575_v42  ;;  %v1383_v11 = vmul.f32 %v2785_v17, %v656_v51  ;;  %v732_v46 = vmul.f32 %v2738_v33, %v513_v24 }
  0xf8   : > { %1898 = vst [vmem:[%s3007_s24 + $0x40] sm:$0xff] %v1834_v58  ;;  %v865_v32 = vmul.f32 %v2751_v39, %v3855_v25  ;;  %v1512_v55 = vmul.f32 %v2797_v23, %v512_v15  ;;  %v1642_v20 = vmul.f32 %v2830_v49, %v3854_v7  ;;  %v1186_v44 = vadd.f32 %v1122_v12, %v1055_v3  ;;  %v3856_v12 = vld [vmem:[#allocation24_spill] sm:$0xff] }
  0xf9   : > { %v1445_v10 = vadd.f32 %v1381_v63, %v1315_v37  ;;  %v1835_v34 = vadd.f32 %v1771_v45, %v1705_v5  ;;  %v1772_v8 = vmul.f32 %v2813_v30, %v656_v51  ;;  %v799_v21 = vadd.f32 %v2748_v38, %v732_v46  ;;  %v587_v5 = vld [vmem:[#allocation2 + $0xc9] sm:$0xff] }
  0xfa   : > { %v995_v27 = vmul.f32 %v2765_v54, %v657_v48  ;;  %v1058_v28 = vadd.f32 %v994_v0, %v928_v53  ;;  %v1124_v2 = vmul.f32 %v2777_v61, %v513_v24  ;;  %v1316_v26 = vadd.f32 %v1252_v13, %v1186_v44  ;;  %v659_v46 = vld [vmem:[#allocation2 + $0xca] sm:$0xff]  ;;  %v516_v44 = vld [vmem:[#allocation2 + $0xd8] sm:$0xff] }
  0xfb   : > { %v1576_v60 = vadd.f32 %v1512_v55, %v1445_v10  ;;  %1899 = vst [vmem:[%s3007_s24 + $0x48] sm:$0xff] %v1835_v34  ;;  %v929_v63 = vadd.f32 %v865_v32, %v799_v21  ;;  %v1254_v15 = vmul.f32 %v2782_v16, %v3855_v25  ;;  %v733_v3 = vmul.f32 %v2738_v33, %v514_v35 }
  0xfc   : > { %v866_v51 = vmul.f32 %v2751_v39, %v3856_v12  ;;  %v1446_v9 = vadd.f32 %v1382_v18, %v1316_v26  ;;  %v1513_v31 = vmul.f32 %v2797_v23, %v513_v24  ;;  %v1643_v41 = vmul.f32 %v2830_v49, %v3855_v25  ;;  %v588_v26 = vld [vmem:[#allocation2 + $0xd9] sm:$0xff] }
  0xfd   : > { %v1706_v7 = vadd.f32 %v1642_v20, %v1576_v60  ;;  %v1384_v13 = vmul.f32 %v2785_v17, %v657_v48  ;;  %v1773_v59 = vmul.f32 %v2813_v30, %v657_v48  ;;  %v800_v22 = vadd.f32 %v2748_v38, %v733_v3 }
  0xfe   : > { %v1187_v45 = vadd.f32 %v1123_v1, %v1056_v47  ;;  %v1577_v58 = vadd.f32 %v1513_v31, %v1446_v9  ;;  %v996_v42 = vmul.f32 %v2765_v54, %v658_v6  ;;  %v1125_v18 = vmul.f32 %v2777_v61, %v514_v35 }
  0xff   : > { %v1836_v50 = vadd.f32 %v1772_v8, %v1706_v7  ;;  %v1059_v0 = vadd.f32 %v995_v27, %v929_v63  ;;  %v930_v24 = vadd.f32 %v866_v51, %v800_v22  ;;  %v1255_v53 = vmul.f32 %v2782_v16, %v3856_v12  ;;  %v517_v22 = vld [vmem:[#allocation2 + $0xe0] sm:$0xff] }
 0x100   : > { %v1317_v37 = vadd.f32 %v1253_v36, %v1187_v45  ;;  %v1707_v48 = vadd.f32 %v1643_v41, %v1577_v58  ;;  %v1385_v25 = vmul.f32 %v2785_v17, %v658_v6  ;;  %v1514_v47 = vmul.f32 %v2797_v23, %v514_v35 }
 0x101   : > { %1900 = vst [vmem:[%s3007_s24 + $0x50] sm:$0xff] %v1836_v50  ;;  %v734_v1 = vmul.f32 %v2738_v33, %v515_v19  ;;  %v1644_v10 = vmul.f32 %v2830_v49, %v3856_v12  ;;  %v1774_v55 = vmul.f32 %v2813_v30, %v658_v6  ;;  %v1188_v20 = vadd.f32 %v1124_v2, %v1057_v43  ;;  %v660_v2 = vld [vmem:[#allocation2 + $0xda] sm:$0xff] }
 0x102   : > { %v1447_v32 = vadd.f32 %v1383_v11, %v1317_v37  ;;  %v1837_v36 = vadd.f32 %v1773_v59, %v1707_v48  ;;  %v867_v8 = vmul.f32 %v2751_v39, %v587_v5  ;;  %v997_v21 = vmul.f32 %v2765_v54, %v659_v46  ;;  %v661_v48 = vld [vmem:[#allocation2 + $0xe2] sm:$0xff] }
 0x103   : > { %v801_v34 = vadd.f32 %v2748_v38, %v734_v1  ;;  %v3170_v27 = vadd.f32 %v996_v42, %v930_v24  ;;  %v1126_v60 = vmul.f32 %v2777_v61, %v515_v19  ;;  %v1318_v11 = vadd.f32 %v1254_v15, %v1188_v20  ;;  %v518_v20 = vld [vmem:[#allocation2 + $0xf0] sm:$0xff] }
 0x104   : > { %v1578_v35 = vadd.f32 %v1514_v47, %v1447_v32  ;;  %1901 = vst [vmem:[%s3007_s24 + $0x58] sm:$0xff] %v1837_v36  ;;  %v1256_v6 = vmul.f32 %v2782_v16, %v587_v5  ;;  %v1386_v43 = vmul.f32 %v2785_v17, %v659_v46  ;;  %v735_v3 = vmul.f32 %v2738_v33, %v516_v44 }
 0x105   : > { %v931_v63 = vadd.f32 %v867_v8, %v801_v34  ;;  %v1448_v51 = vadd.f32 %v1384_v13, %v1318_v11  ;;  %v1515_v7 = vmul.f32 %v2797_v23, %v515_v19  ;;  %v1645_v9 = vmul.f32 %v2830_v49, %v587_v5  ;;  %v589_v5 = vld [vmem:[#allocation2 + $0xe1] sm:$0xff] }
 0x106   : > { %v1708_v12 = vadd.f32 %v1644_v10, %v1578_v35  ;;  %v1775_v31 = vmul.f32 %v2813_v30, %v659_v46  ;;  %v802_v15 = vadd.f32 %v2748_v38, %v735_v3  ;;  %v868_v41 = vmul.f32 %v2751_v39, %v588_v26  ;;  %v590_v35 = vld [vmem:[#allocation2 + $0xf1] sm:$0xff] }
 0x107   : > { %v1189_v59 = vadd.f32 %v1125_v18, %v1058_v28  ;;  %v1579_v50 = vadd.f32 %v1515_v7, %v1448_v51  ;;  %v998_v58 = vmul.f32 %v2765_v54, %v660_v2  ;;  %v1127_v42 = vmul.f32 %v2777_v61, %v516_v44  ;;  %v3208_v51 = vld [vmem:[%s2588_s18] ss:$0 sm:$0xff] }
 0x108   : > { %v1838_v45 = vadd.f32 %v1774_v55, %v1708_v12  ;;  %v1061_v13 = vadd.f32 %v997_v21, %v931_v63  ;;  %v932_v24 = vadd.f32 %v868_v41, %v802_v15  ;;  %v1257_v19 = vmul.f32 %v2782_v16, %v588_v26  ;;  %v519_v41 = vld [vmem:[#allocation2 + $0xf8] sm:$0xff] }
 0x109   : > { %v1319_v37 = vadd.f32 %v1255_v53, %v1189_v59  ;;  %v1709_v46 = vadd.f32 %v1645_v9, %v1579_v50  ;;  %v1387_v47 = vmul.f32 %v2785_v17, %v660_v2  ;;  %v1516_v28 = vmul.f32 %v2797_v23, %v516_v44  ;;  %v3212_v9 = vld [vmem:[%s2563_s27 + $0x1] ss:$0 sm:$0xff] }
 0x10a   : > { %1902 = vst [vmem:[%s3007_s24 + $0x60] sm:$0xff] %v1838_v45  ;;  %v736_v18 = vmul.f32 %v2738_v33, %v517_v22  ;;  %v1646_v32 = vmul.f32 %v2830_v49, %v588_v26  ;;  %v1776_v10 = vmul.f32 %v2813_v30, %v660_v2  ;;  %v1190_v55 = vadd.f32 %v1126_v60, %v1059_v0  ;;  %v3201_v26 = vld [vmem:[%s2563_s27] ss:$0 sm:$0xff] }
 0x10b   : > { %v1449_v1 = vadd.f32 %v1385_v25, %v1319_v37  ;;  %v1839_v53 = vadd.f32 %v1775_v31, %v1709_v46  ;;  %v869_v34 = vmul.f32 %v2751_v39, %v589_v5  ;;  %v999_v8 = vmul.f32 %v2765_v54, %v661_v48 }
 0x10c   : > { %v803_v36 = vadd.f32 %v2748_v38, %v736_v18  ;;  %v3194_v21 = vadd.f32 %v998_v58, %v932_v24  ;;  %v1128_v33 = vmul.f32 %v2777_v61, %v517_v22  ;;  %v1320_v25 = vadd.f32 %v1256_v6, %v1190_v55  ;;  %v662_v38 = vld [vmem:[#allocation2 + $0xf2] sm:$0xff] }
 0x10d   : > { %v1580_v44 = vadd.f32 %v1516_v28, %v1449_v1  ;;  %1903 = vst [vmem:[%s3007_s24 + $0x68] sm:$0xff] %v1839_v53  ;;  %v1258_v60 = vmul.f32 %v2782_v16, %v589_v5  ;;  %v1388_v11 = vmul.f32 %v2785_v17, %v661_v48  ;;  %v737_v39 = vmul.f32 %v3201_v26, %v518_v20  ;;  %v592_v53 = vld [vmem:[#allocation2 + $0x109] sm:$0xff] }
 0x10e   : > { %v933_v0 = vadd.f32 %v869_v34, %v803_v36  ;;  %v1450_v2 = vadd.f32 %v1386_v43, %v1320_v25  ;;  %v1517_v3 = vmul.f32 %v2797_v23, %v517_v22  ;;  %v1647_v12 = vmul.f32 %v2830_v49, %v589_v5  ;;  %v591_v5 = vld [vmem:[#allocation2 + $0xf9] sm:$0xff]  ;;  %v3241_v34 = vld [vmem:[%s2563_s27 + $0x5] ss:$0 sm:$0xff] }
 0x10f   : > { %v1710_v63 = vadd.f32 %v1646_v32, %v1580_v44  ;;  %v1777_v6 = vmul.f32 %v2813_v30, %v661_v48  ;;  %v804_v7 = vadd.f32 %v3208_v51, %v737_v39  ;;  %v870_v31 = vmul.f32 %v3212_v9, %v590_v35  ;;  %v663_v48 = vld [vmem:[#allocation2 + $0xfa] sm:$0xff]  ;;  %v3245_v44 = vld [vmem:[%s2563_s27 + $0x6] ss:$0 sm:$0xff]  ;;  %v664_v25 = vld [vmem:[#allocation2 + $0x10a] sm:$0xff] }
 0x110   : > { %v1191_v15 = vadd.f32 %v1127_v42, %v3170_v27  ;;  %v1581_v43 = vadd.f32 %v1517_v3, %v1450_v2  ;;  %v1000_v22 = vmul.f32 %v2765_v54, %v662_v38  ;;  %v1129_v45 = vmul.f32 %v2777_v61, %v518_v20  ;;  %v3250_v39 = vld [vmem:[%s2563_s27 + $0x8] ss:$0 sm:$0xff]  ;;  %v3255_v2 = vld [vmem:[%s2563_s27 + $0xa] ss:$0 sm:$0xff] }
 0x111   : > { %v1840_v59 = vadd.f32 %v1776_v10, %v1710_v63  ;;  %v3218_v50 = vadd.f32 %v999_v8, %v933_v0  ;;  %v934_v58 = vadd.f32 %v870_v31, %v804_v7  ;;  %v1259_v24 = vmul.f32 %v2782_v16, %v590_v35  ;;  %v521_v31 = vld [vmem:[#allocation2 + $0x110] sm:$0xff] }
 0x112   : > { %v1321_v37 = vadd.f32 %v1257_v19, %v1191_v15  ;;  %v1711_v46 = vadd.f32 %v1647_v12, %v1581_v43  ;;  %v1389_v27 = vmul.f32 %v2785_v17, %v662_v38  ;;  %v1518_v42 = vmul.f32 %v2797_v23, %v518_v20  ;;  %v520_v19 = vld [vmem:[#allocation2 + $0x108] sm:$0xff]  ;;  %v3236_v20 = vld [vmem:[%s2563_s27 + $0x4] ss:$0 sm:$0xff] }
 0x113   : > { %1904 = vst [vmem:[%s3007_s24 + $0x70] sm:$0xff] %v1840_v59  ;;  %v738_v54 = vmul.f32 %v3201_v26, %v519_v41  ;;  %v1648_v61 = vmul.f32 %v2830_v49, %v590_v35  ;;  %v1778_v18 = vmul.f32 %v2813_v30, %v662_v38  ;;  %v1192_v16 = vadd.f32 %v1128_v33, %v1061_v13  ;;  %v3230_v17 = vld [vmem:[%s2563_s27 + $0x2] ss:$0 sm:$0xff] }
 0x114   : > { %v1451_v28 = vadd.f32 %v1387_v47, %v1321_v37  ;;  %v1841_v1 = vadd.f32 %v1777_v6, %v1711_v46  ;;  %v871_v10 = vmul.f32 %v3212_v9, %v591_v5  ;;  %v1001_v23 = vmul.f32 %v3230_v17, %v663_v48  ;;  %v593_v37 = vld [vmem:[#allocation2 + $0x111] sm:$0xff] }
 0x115   : > { %v805_v32 = vadd.f32 %v3208_v51, %v738_v54  ;;  %v3233_v55 = vadd.f32 %v1000_v22, %v934_v58  ;;  %v1130_v30 = vmul.f32 %v3236_v20, %v519_v41  ;;  %v1322_v13 = vadd.f32 %v1258_v60, %v1192_v16  ;;  %v3269_v54 = vld [vmem:[%s2563_s27 + $0x9] ss:$0 sm:$0xff] }
 0x116   : > { %v1582_v47 = vadd.f32 %v1518_v42, %v1451_v28  ;;  %1905 = vst [vmem:[%s3007_s24 + $0x78] sm:$0xff] %v1841_v1  ;;  %v1260_v8 = vmul.f32 %v3241_v34, %v591_v5  ;;  %v1390_v33 = vmul.f32 %v3245_v44, %v663_v48  ;;  %v739_v35 = vmul.f32 %v3201_v26, %v520_v19 }
 0x117   : > { %v935_v36 = vadd.f32 %v871_v10, %v805_v32  ;;  %v1452_v38 = vadd.f32 %v1388_v11, %v1322_v13  ;;  %v1519_v60 = vmul.f32 %v3250_v39, %v519_v41  ;;  %v1649_v63 = vmul.f32 %v2830_v49, %v591_v5  ;;  %v665_v5 = vld [vmem:[#allocation2 + $0x112] sm:$0xff]  ;;  %v594_v13 = vld [vmem:[#allocation2 + $0x121] sm:$0xff] }
 0x118   : > { %v1712_v0 = vadd.f32 %v1648_v61, %v1582_v47  ;;  %v1779_v3 = vmul.f32 %v3255_v2, %v663_v48  ;;  %v806_v12 = vadd.f32 %v3208_v51, %v739_v35  ;;  %v872_v6 = vmul.f32 %v3212_v9, %v592_v53 }
 0x119   : > { %v1193_v7 = vadd.f32 %v1129_v45, %v3194_v21  ;;  %v1583_v11 = vadd.f32 %v1519_v60, %v1452_v38  ;;  %v1002_v59 = vmul.f32 %v3230_v17, %v664_v25  ;;  %v1131_v41 = vmul.f32 %v3236_v20, %v520_v19 }
 0x11a   : > { %v1842_v15 = vadd.f32 %v1778_v18, %v1712_v0  ;;  %v1065_v49 = vadd.f32 %v1001_v23, %v935_v36  ;;  %v936_v43 = vadd.f32 %v872_v6, %v806_v12  ;;  %v1261_v22 = vmul.f32 %v3241_v34, %v592_v53  ;;  %v522_v18 = vld [vmem:[#allocation2 + $0x120] sm:$0xff]  ;;  %v523_v6 = vld [vmem:[#allocation2 + $0x128] sm:$0xff] }
 0x11b   : > { %v1323_v58 = vadd.f32 %v1259_v24, %v1193_v7  ;;  %v1713_v48 = vadd.f32 %v1649_v63, %v1583_v11  ;;  %v1391_v46 = vmul.f32 %v3245_v44, %v664_v25  ;;  %v1520_v21 = vmul.f32 %v3250_v39, %v520_v19 }
 0x11c   : > { %1906 = vst [vmem:[%s3007_s24 + $0x80] sm:$0xff] %v1842_v15  ;;  %v740_v45 = vmul.f32 %v3201_v26, %v521_v31  ;;  %v1650_v28 = vmul.f32 %v3269_v54, %v592_v53  ;;  %v1780_v61 = vmul.f32 %v3255_v2, %v664_v25  ;;  %v1194_v24 = vadd.f32 %v1130_v30, %v3218_v50  ;;  %v666_v30 = vld [vmem:[#allocation2 + $0x122] sm:$0xff] }
 0x11d   : > { %v1453_v42 = vadd.f32 %v1389_v27, %v1323_v58  ;;  %v1843_v16 = vadd.f32 %v1779_v3, %v1713_v48  ;;  %v873_v32 = vmul.f32 %v3212_v9, %v593_v37  ;;  %v1003_v19 = vmul.f32 %v3230_v17, %v665_v5 }
 0x11e   : > { %v807_v1 = vadd.f32 %v3208_v51, %v740_v45  ;;  %v1066_v10 = vadd.f32 %v1002_v59, %v936_v43  ;;  %v1132_v27 = vmul.f32 %v3236_v20, %v521_v31  ;;  %v1324_v47 = vadd.f32 %v1260_v8, %v1194_v24  ;;  %v524_v24 = vld [vmem:[#allocation2 + $0x138] sm:$0xff] }
 0x11f   : > { %v1584_v23 = vadd.f32 %v1520_v21, %v1453_v42  ;;  %1907 = vst [vmem:[%s3007_s24 + $0x88] sm:$0xff] %v1843_v16  ;;  %v1262_v36 = vmul.f32 %v3241_v34, %v593_v37  ;;  %v1392_v50 = vmul.f32 %v3245_v44, %v665_v5  ;;  %v741_v25 = vmul.f32 %v3201_v26, %v522_v18 }
 0x120   : > { %v937_v53 = vadd.f32 %v873_v32, %v807_v1  ;;  %v1454_v0 = vadd.f32 %v1390_v33, %v1324_v47  ;;  %v1521_v38 = vmul.f32 %v3250_v39, %v521_v31  ;;  %v1651_v60 = vmul.f32 %v3269_v54, %v593_v37  ;;  %v595_v37 = vld [vmem:[#allocation2 + $0x129] sm:$0xff] }
 0x121   : > { %v1714_v35 = vadd.f32 %v1650_v28, %v1584_v23  ;;  %v1781_v63 = vmul.f32 %v3255_v2, %v665_v5  ;;  %v808_v8 = vadd.f32 %v3208_v51, %v741_v25  ;;  %v874_v3 = vmul.f32 %v3212_v9, %v594_v13  ;;  %v667_v5 = vld [vmem:[#allocation2 + $0x12a] sm:$0xff] }
 0x122   : > { %v1195_v12 = vadd.f32 %v1131_v41, %v3233_v55  ;;  %v1585_v15 = vadd.f32 %v1521_v38, %v1454_v0  ;;  %v1004_v11 = vmul.f32 %v3230_v17, %v666_v30  ;;  %v1133_v33 = vmul.f32 %v3236_v20, %v522_v18 }
 0x123   : > { %v1844_v7 = vadd.f32 %v1780_v61, %v1714_v35  ;;  %v1067_v59 = vadd.f32 %v1003_v19, %v937_v53  ;;  %v938_v31 = vadd.f32 %v874_v3, %v808_v8  ;;  %v1263_v43 = vmul.f32 %v3241_v34, %v594_v13  ;;  %v596_v53 = vld [vmem:[#allocation2 + $0x139] sm:$0xff] }
 0x124   : > { %v1325_v58 = vadd.f32 %v1261_v22, %v1195_v12  ;;  %v1715_v48 = vadd.f32 %v1651_v60, %v1585_v15  ;;  %v1393_v21 = vmul.f32 %v3245_v44, %v666_v30  ;;  %v1522_v55 = vmul.f32 %v3250_v39, %v522_v18  ;;  %v525_v3 = vld [vmem:[#allocation2 + $0x140] sm:$0xff] }
 0x125   : > { %1908 = vst [vmem:[%s3007_s24 + $0x90] sm:$0xff] %v1844_v7  ;;  %v742_v41 = vmul.f32 %v3201_v26, %v523_v6  ;;  %v1652_v42 = vmul.f32 %v3269_v54, %v594_v13  ;;  %v1782_v28 = vmul.f32 %v3255_v2, %v666_v30  ;;  %v1196_v61 = vadd.f32 %v1132_v27, %v1065_v49  ;;  %v668_v27 = vld [vmem:[#allocation2 + $0x13a] sm:$0xff] }
 0x126   : > { %v1455_v45 = vadd.f32 %v1391_v46, %v1325_v58  ;;  %v1845_v16 = vadd.f32 %v1781_v63, %v1715_v48  ;;  %v875_v1 = vmul.f32 %v3212_v9, %v595_v37  ;;  %v1005_v32 = vmul.f32 %v3230_v17, %v667_v5  ;;  %v669_v48 = vld [vmem:[#allocation2 + $0x142] sm:$0xff] }
 0x127   : > { %v809_v22 = vadd.f32 %v3208_v51, %v742_v41  ;;  %v1068_v19 = vadd.f32 %v1004_v11, %v938_v31  ;;  %v1134_v18 = vmul.f32 %v3236_v20, %v523_v6  ;;  %v1326_v47 = vadd.f32 %v1262_v36, %v1196_v61  ;;  %v526_v61 = vld [vmem:[#allocation2 + $0x150] sm:$0xff] }
 0x128   : > { %v1586_v23 = vadd.f32 %v1522_v55, %v1455_v45  ;;  %1909 = vst [vmem:[%s3007_s24 + $0x98] sm:$0xff] %v1845_v16  ;;  %v1264_v13 = vmul.f32 %v3241_v34, %v595_v37  ;;  %v1394_v49 = vmul.f32 %v3245_v44, %v667_v5  ;;  %v743_v30 = vmul.f32 %v3201_v26, %v524_v24 }
 0x129   : > { %v939_v46 = vadd.f32 %v875_v1, %v809_v22  ;;  %v1456_v35 = vadd.f32 %v1392_v50, %v1326_v47  ;;  %v1523_v0 = vmul.f32 %v3250_v39, %v523_v6  ;;  %v1653_v38 = vmul.f32 %v3269_v54, %v595_v37  ;;  %v597_v37 = vld [vmem:[#allocation2 + $0x141] sm:$0xff] }
 0x12a   : > { %v1716_v25 = vadd.f32 %v1652_v42, %v1586_v23  ;;  %v1783_v60 = vmul.f32 %v3255_v2, %v667_v5  ;;  %v810_v36 = vadd.f32 %v3208_v51, %v743_v30  ;;  %v876_v63 = vmul.f32 %v3212_v9, %v596_v53 }
 0x12b   : > { %v1197_v8 = vadd.f32 %v1133_v33, %v1066_v10  ;;  %v1587_v7 = vadd.f32 %v1523_v0, %v1456_v35  ;;  %v1006_v15 = vmul.f32 %v3230_v17, %v668_v27  ;;  %v1135_v11 = vmul.f32 %v3236_v20, %v524_v24 }
 0x12c   : > { %v1846_v12 = vadd.f32 %v1782_v28, %v1716_v25  ;;  %v1069_v50 = vadd.f32 %v1005_v32, %v939_v46  ;;  %v940_v31 = vadd.f32 %v876_v63, %v810_v36  ;;  %v1265_v6 = vmul.f32 %v3241_v34, %v596_v53  ;;  %v598_v46 = vld [vmem:[#allocation2 + $0x151] sm:$0xff] }
 0x12d   : > { %v1327_v58 = vadd.f32 %v1263_v43, %v1197_v8  ;;  %v1717_v5 = vadd.f32 %v1653_v38, %v1587_v7  ;;  %v1395_v55 = vmul.f32 %v3245_v44, %v668_v27  ;;  %v1524_v10 = vmul.f32 %v3250_v39, %v524_v24  ;;  %v527_v63 = vld [vmem:[#allocation2 + $0x158] sm:$0xff] }
 0x12e   : > { %1910 = vst [vmem:[%s3007_s24 + $0xa0] sm:$0xff] %v1846_v12  ;;  %v744_v33 = vmul.f32 %v3201_v26, %v525_v3  ;;  %v1654_v45 = vmul.f32 %v3269_v54, %v596_v53  ;;  %v1784_v42 = vmul.f32 %v3255_v2, %v668_v27  ;;  %v1198_v28 = vadd.f32 %v1134_v18, %v1067_v59  ;;  %v670_v18 = vld [vmem:[#allocation2 + $0x152] sm:$0xff] }
 0x12f   : > { %v1457_v41 = vadd.f32 %v1393_v21, %v1327_v58  ;;  %v1847_v16 = vadd.f32 %v1783_v60, %v1717_v5  ;;  %v877_v22 = vmul.f32 %v3212_v9, %v597_v37  ;;  %v1007_v1 = vmul.f32 %v3230_v17, %v669_v48  ;;  %v671_v5 = vld [vmem:[#allocation2 + $0x15a] sm:$0xff] }
 0x130   : > { %v811_v43 = vadd.f32 %v3208_v51, %v744_v33  ;;  %v1070_v32 = vadd.f32 %v1006_v15, %v940_v31  ;;  %v1136_v24 = vmul.f32 %v3236_v20, %v525_v3  ;;  %v1328_v47 = vadd.f32 %v1264_v13, %v1198_v28  ;;  %v528_v28 = vld [vmem:[#allocation2 + $0x168] sm:$0xff] }
 0x131   : > { %v1588_v23 = vadd.f32 %v1524_v10, %v1457_v41  ;;  %1911 = vst [vmem:[%s3007_s24 + $0xa8] sm:$0xff] %v1847_v16  ;;  %v1266_v53 = vmul.f32 %v3241_v34, %v597_v37  ;;  %v1396_v59 = vmul.f32 %v3245_v44, %v669_v48  ;;  %v745_v27 = vmul.f32 %v3201_v26, %v526_v61 }
 0x132   : > { %v941_v21 = vadd.f32 %v877_v22, %v811_v43  ;;  %v1458_v25 = vadd.f32 %v1394_v49, %v1328_v47  ;;  %v1525_v35 = vmul.f32 %v3250_v39, %v525_v3  ;;  %v1655_v0 = vmul.f32 %v3269_v54, %v597_v37  ;;  %v599_v37 = vld [vmem:[#allocation2 + $0x159] sm:$0xff] }
 0x133   : > { %v1718_v30 = vadd.f32 %v1654_v45, %v1588_v23  ;;  %v1785_v38 = vmul.f32 %v3255_v2, %v669_v48  ;;  %v812_v13 = vadd.f32 %v3208_v51, %v745_v27  ;;  %v878_v60 = vmul.f32 %v3212_v9, %v598_v46 }
 0x134   : > { %v1199_v36 = vadd.f32 %v1135_v11, %v1068_v19  ;;  %v1589_v12 = vadd.f32 %v1525_v35, %v1458_v25  ;;  %v1008_v7 = vmul.f32 %v3230_v17, %v670_v18  ;;  %v1137_v15 = vmul.f32 %v3236_v20, %v526_v61 }
 0x135   : > { %v1848_v8 = vadd.f32 %v1784_v42, %v1718_v30  ;;  %v1071_v49 = vadd.f32 %v1007_v1, %v941_v21  ;;  %v942_v31 = vadd.f32 %v878_v60, %v812_v13  ;;  %v1267_v3 = vmul.f32 %v3241_v34, %v598_v46  ;;  %v600_v21 = vld [vmem:[#allocation2 + $0x169] sm:$0xff] }
 0x136   : > { %v1329_v58 = vadd.f32 %v1265_v6, %v1199_v36  ;;  %v1719_v48 = vadd.f32 %v1655_v0, %v1589_v12  ;;  %v1397_v10 = vmul.f32 %v3245_v44, %v670_v18  ;;  %v1526_v19 = vmul.f32 %v3250_v39, %v526_v61  ;;  %v529_v60 = vld [vmem:[#allocation2 + $0x170] sm:$0xff] }
 0x137   : > { %1912 = vst [vmem:[%s3007_s24 + $0xb0] sm:$0xff] %v1848_v8  ;;  %v746_v11 = vmul.f32 %v3201_v26, %v527_v63  ;;  %v1656_v41 = vmul.f32 %v3269_v54, %v598_v46  ;;  %v1786_v45 = vmul.f32 %v3255_v2, %v670_v18  ;;  %v1200_v42 = vadd.f32 %v1136_v24, %v1069_v50  ;;  %v672_v24 = vld [vmem:[#allocation2 + $0x16a] sm:$0xff] }
 0x138   : > { %v1459_v33 = vadd.f32 %v1395_v55, %v1329_v58  ;;  %v1849_v16 = vadd.f32 %v1785_v38, %v1719_v48  ;;  %v879_v43 = vmul.f32 %v3212_v9, %v599_v37  ;;  %v1009_v22 = vmul.f32 %v3230_v17, %v671_v5  ;;  %v673_v48 = vld [vmem:[#allocation2 + $0x172] sm:$0xff] }
 0x139   : > { %v813_v6 = vadd.f32 %v3208_v51, %v746_v11  ;;  %v1072_v1 = vadd.f32 %v1008_v7, %v942_v31  ;;  %v1138_v61 = vmul.f32 %v3236_v20, %v527_v63  ;;  %v1330_v47 = vadd.f32 %v1266_v53, %v1200_v42 }
 0x13a   : > { %v1590_v23 = vadd.f32 %v1526_v19, %v1459_v33  ;;  %1913 = vst [vmem:[%s3007_s24 + $0xb8] sm:$0xff] %v1849_v16  ;;  %v1268_v46 = vmul.f32 %v3241_v34, %v599_v37  ;;  %v1398_v50 = vmul.f32 %v3245_v44, %v671_v5  ;;  %v747_v18 = vmul.f32 %v3201_v26, %v528_v28 }
 0x13b   : > { %v943_v55 = vadd.f32 %v879_v43, %v813_v6  ;;  %v1460_v30 = vadd.f32 %v1396_v59, %v1330_v47  ;;  %v1527_v25 = vmul.f32 %v3250_v39, %v527_v63  ;;  %v1657_v35 = vmul.f32 %v3269_v54, %v599_v37  ;;  %v601_v37 = vld [vmem:[#allocation2 + $0x171] sm:$0xff]  ;;  %v530_v47 = vld [vmem:[#allocation2 + $0x180] sm:$0xff] }
 0x13c   : > { %v1720_v27 = vadd.f32 %v1656_v41, %v1590_v23  ;;  %v1787_v0 = vmul.f32 %v3255_v2, %v671_v5  ;;  %v814_v53 = vadd.f32 %v3208_v51, %v747_v18  ;;  %v880_v38 = vmul.f32 %v3212_v9, %v600_v21 }
 0x13d   : > { %v1201_v13 = vadd.f32 %v1137_v15, %v1070_v32  ;;  %v1591_v8 = vadd.f32 %v1527_v25, %v1460_v30  ;;  %v1010_v12 = vmul.f32 %v3230_v17, %v672_v24  ;;  %v1139_v7 = vmul.f32 %v3236_v20, %v528_v28 }
 0x13e   : > { %v1850_v36 = vadd.f32 %v1786_v45, %v1720_v27  ;;  %v1073_v59 = vadd.f32 %v1009_v22, %v943_v55  ;;  %v944_v31 = vadd.f32 %v880_v38, %v814_v53  ;;  %v1269_v63 = vmul.f32 %v3241_v34, %v600_v21  ;;  %v602_v55 = vld [vmem:[#allocation2 + $0x181] sm:$0xff] }
 0x13f   : > { %v1331_v58 = vadd.f32 %v1267_v3, %v1201_v13  ;;  %v1721_v5 = vadd.f32 %v1657_v35, %v1591_v8  ;;  %v1399_v19 = vmul.f32 %v3245_v44, %v672_v24  ;;  %v1528_v32 = vmul.f32 %v3250_v39, %v528_v28  ;;  %v674_v35 = vld [vmem:[#allocation2 + $0x182] sm:$0xff] }
 0x140   : > { %1914 = vst [vmem:[%s3007_s24 + $0xc0] sm:$0xff] %v1850_v36  ;;  %v748_v15 = vmul.f32 %v3201_v26, %v529_v60  ;;  %v1658_v33 = vmul.f32 %v3269_v54, %v600_v21  ;;  %v1788_v41 = vmul.f32 %v3255_v2, %v672_v24  ;;  %v1202_v45 = vadd.f32 %v1138_v61, %v1071_v49  ;;  %v531_v24 = vld [vmem:[#allocation2 + $0x188] sm:$0xff] }
 0x141   : > { %v1461_v11 = vadd.f32 %v1397_v10, %v1331_v58  ;;  %v1851_v42 = vadd.f32 %v1787_v0, %v1721_v5  ;;  %v881_v16 = vmul.f32 %v3212_v9, %v601_v37  ;;  %v1011_v6 = vmul.f32 %v3230_v17, %v673_v48  ;;  %v603_v13 = vld [vmem:[#allocation2 + $0x189] sm:$0xff] }
 0x142   : > { %v815_v3 = vadd.f32 %v3208_v51, %v748_v15  ;;  %v1074_v43 = vadd.f32 %v1010_v12, %v944_v31  ;;  %v1140_v28 = vmul.f32 %v3236_v20, %v529_v60  ;;  %v1332_v23 = vadd.f32 %v1268_v46, %v1202_v45  ;;  %v675_v12 = vld [vmem:[#allocation2 + $0x18a] sm:$0xff]  ;;  %v540_v45 = vld [vmem:[#allocation2 + $0x1f8] sm:$0xff] }
 0x143   : > { %v1592_v22 = vadd.f32 %v1528_v32, %v1461_v11  ;;  %1915 = vst [vmem:[%s3007_s24 + $0xc8] sm:$0xff] %v1851_v42  ;;  %v1270_v21 = vmul.f32 %v3241_v34, %v601_v37  ;;  %v1400_v49 = vmul.f32 %v3245_v44, %v673_v48  ;;  %v1203_v61 = vadd.f32 %v1139_v7, %v1072_v1  ;;  %v532_v32 = vld [vmem:[#allocation2 + $0x198] sm:$0xff] }
 0x144   : > { %v945_v10 = vadd.f32 %v881_v16, %v815_v3  ;;  %v1462_v27 = vadd.f32 %v1398_v50, %v1332_v23  ;;  %v1529_v30 = vmul.f32 %v3250_v39, %v529_v60  ;;  %v1659_v25 = vmul.f32 %v3269_v54, %v601_v37 }
 0x145   : > { %v1722_v18 = vadd.f32 %v1658_v33, %v1592_v22  ;;  %v1789_v46 = vmul.f32 %v3255_v2, %v673_v48  ;;  %v1141_v0 = vmul.f32 %v3236_v20, %v530_v47  ;;  %v1271_v53 = vmul.f32 %v3241_v34, %v602_v55  ;;  %v604_v22 = vld [vmem:[#allocation2 + $0x199] sm:$0xff] }
 0x146   : > { %v1333_v38 = vadd.f32 %v1269_v63, %v1203_v61  ;;  %v1075_v8 = vadd.f32 %v1011_v6, %v945_v10  ;;  %v1593_v1 = vadd.f32 %v1529_v30, %v1462_v27  ;;  %v1142_v50 = vmul.f32 %v3236_v20, %v531_v24  ;;  %v612_v61 = vld [vmem:[#allocation2 + $0x1f9] sm:$0xff] }
 0x147   : > { %v1852_v36 = vadd.f32 %v1788_v41, %v1722_v18  ;;  %v1401_v60 = vmul.f32 %v3245_v44, %v674_v35  ;;  %v1530_v31 = vmul.f32 %v3250_v39, %v530_v47  ;;  %v1204_v58 = vadd.f32 %v1140_v28, %v1073_v59  ;;  %v605_v47 = vld [vmem:[#allocation2 + $0x1a1] sm:$0xff] }
 0x148   : > { %v1463_v7 = vadd.f32 %v1399_v19, %v1333_v38  ;;  %v1723_v37 = vadd.f32 %v1659_v25, %v1593_v1  ;;  %v1660_v48 = vmul.f32 %v3269_v54, %v602_v55  ;;  %v1790_v5 = vmul.f32 %v3255_v2, %v674_v35  ;;  %v676_v30 = vld [vmem:[#allocation2 + $0x19a] sm:$0xff] }
 0x149   : > { %1916 = vst [vmem:[%s3007_s24 + $0xd0] sm:$0xff] %v1852_v36  ;;  %v1272_v63 = vmul.f32 %v3241_v34, %v603_v13  ;;  %v1334_v11 = vadd.f32 %v1270_v21, %v1204_v58  ;;  %v1402_v33 = vmul.f32 %v3245_v44, %v675_v12  ;;  %v1205_v41 = vadd.f32 %v1141_v0, %v1074_v43  ;;  %v2219_v43 = vld [vmem:[#allocation2 + $0x8] sm:$0xff] }
 0x14a   : > { %v1594_v15 = vadd.f32 %v1530_v31, %v1463_v7  ;;  %v1853_v19 = vadd.f32 %v1789_v46, %v1723_v37  ;;  %v1531_v42 = vmul.f32 %v3250_v39, %v531_v24  ;;  %v1661_v59 = vmul.f32 %v3269_v54, %v603_v13  ;;  %v677_v36 = vld [vmem:[#allocation2 + $0x1a2] sm:$0xff] }
 0x14b   : > { %v1206_v3 = vadd.f32 %v1142_v50, %v1075_v8  ;;  %v1464_v6 = vadd.f32 %v1400_v49, %v1334_v11  ;;  %v1335_v28 = vadd.f32 %v1271_v53, %v1205_v41  ;;  %v1532_v23 = vmul.f32 %v3250_v39, %v532_v32  ;;  %v684_v8 = vld [vmem:[#allocation2 + $0x1fa] sm:$0xff]  ;;  %v2220_v50 = vld [vmem:[#allocation2 + $0x1e9] sm:$0xff] }
 0x14c   : > { %v1724_v16 = vadd.f32 %v1660_v48, %v1594_v15  ;;  %1917 = vst [vmem:[%s3007_s24 + $0xd8] sm:$0xff] %v1853_v19  ;;  %v1791_v55 = vmul.f32 %v3255_v2, %v675_v12  ;;  %v1533_v21 = vmul.f32 %v2219_v43, %v3250_v39  ;;  %v755_v24 = vmul.f32 %v3201_v26, %v540_v45  ;;  %v541_v37 = vld [vmem:[#allocation2 + $0x200] sm:$0xff] }
 0x14d   : > { %v1336_v10 = vadd.f32 %v1272_v63, %v1206_v3  ;;  %v1595_v27 = vadd.f32 %v1531_v42, %v1464_v6  ;;  %v1465_v49 = vadd.f32 %v1401_v60, %v1335_v28  ;;  %v818_v25 = vadd.f32 %v3208_v51, %v2901_v4  ;;  %v2221_v60 = vld [vmem:[#allocation2 + $0x1ea] sm:$0xff]  ;;  %v613_v42 = vld [vmem:[#allocation2 + $0x201] sm:$0xff] }
 0x14e   : > { %v1854_v18 = vadd.f32 %v1790_v5, %v1724_v16  ;;  %v1662_v35 = vmul.f32 %v3269_v54, %v604_v22  ;;  %v1663_v0 = vmul.f32 %v3269_v54, %v605_v47  ;;  %v822_v53 = vadd.f32 %v3208_v51, %v755_v24 }
 0x14f   : > { %v1466_v46 = vadd.f32 %v1402_v33, %v1336_v10  ;;  %v1725_v38 = vadd.f32 %v1661_v59, %v1595_v27  ;;  %v1596_v13 = vadd.f32 %v1532_v23, %v1465_v49  ;;  %v888_v1 = vmul.f32 %v3212_v9, %v612_v61  ;;  %v685_v59 = vld [vmem:[#allocation2 + $0x202] sm:$0xff]  ;;  %v542_v23 = vld [vmem:[#allocation2 + $0x210] sm:$0xff] }
 0x150   : > { %1918 = vst [vmem:[%s3007_s24 + $0xe0] sm:$0xff] %v1854_v18  ;;  %v948_v12 = vadd.f32 %v2912_v56, %v818_v25  ;;  %v1276_v4 = vmul.f32 %v2220_v50, %v3241_v34  ;;  %v3400_v7 = vmul.f32 %v2221_v60, %v3245_v44  ;;  %v1792_v31 = vmul.f32 %v3255_v2, %v676_v30  ;;  %v614_v25 = vld [vmem:[#allocation2 + $0x211] sm:$0xff] }
 0x151   : > { %v1597_v58 = vadd.f32 %v1533_v21, %v1466_v46  ;;  %v1855_v48 = vadd.f32 %v1791_v55, %v1725_v38  ;;  %v1726_v5 = vadd.f32 %v1662_v35, %v1596_v13  ;;  %v952_v63 = vadd.f32 %v888_v1, %v822_v53  ;;  %v3857_v55 = vld [vmem:[#allocation26_spill] sm:$0xff]  ;;  %v3859_v53 = vld [vmem:[#allocation25_spill] sm:$0xff] }
 0x152   : > { %v1078_v32 = vadd.f32 %v2921_v62, %v948_v12  ;;  %v1793_v56 = vmul.f32 %v3255_v2, %v677_v36  ;;  %v1018_v11 = vmul.f32 %v3230_v17, %v684_v8  ;;  %v1147_v33 = vmul.f32 %v3236_v20, %v540_v45  ;;  %v543_v1 = vld [vmem:[#allocation2 + $0x218] sm:$0xff] }
 0x153   : > { %v1727_v15 = vadd.f32 %v1663_v0, %v1597_v58  ;;  %1919 = vst [vmem:[%s3007_s24 + $0xe8] sm:$0xff] %v1855_v48  ;;  %v1856_v41 = vadd.f32 %v1792_v31, %v1726_v5  ;;  %v756_v3 = vmul.f32 %v3201_v26, %v541_v37  ;;  %v819_v62 = vadd.f32 %v3208_v51, %v2961_v57  ;;  %v686_v0 = vld [vmem:[#allocation2 + $0x212] sm:$0xff] }
 0x154   : > { %v1209_v19 = vadd.f32 %v2925_v14, %v1078_v32  ;;  %v1277_v6 = vmul.f32 %v3241_v34, %v612_v61  ;;  %v1407_v22 = vmul.f32 %v3245_v44, %v684_v8  ;;  %v1536_v28 = vmul.f32 %v3250_v39, %v540_v45  ;;  %v3858_v45 = vld [vmem:[#allocation27_spill] sm:$0xff] }
 0x155   : > { %v1857_v16 = vadd.f32 %v1793_v56, %v1727_v15  ;;  %1920 = vst [vmem:[%s3007_s24 + $0xf0] sm:$0xff] %v1856_v41  ;;  %v3416_v47 = vadd.f32 %v1018_v11, %v952_v63  ;;  %v823_v10 = vadd.f32 %v3208_v51, %v756_v3  ;;  %v949_v43 = vadd.f32 %v2965_v29, %v819_v62  ;;  %v615_v15 = vld [vmem:[#allocation2 + $0x219] sm:$0xff]  ;;  %v3860_v62 = vld [vmem:[#allocation28_spill] sm:$0xff] }
 0x156   : > { %v1339_v14 = vadd.f32 %v3857_v55, %v1209_v19  ;;  %v1666_v57 = vmul.f32 %v3269_v54, %v612_v61  ;;  %v1796_v21 = vmul.f32 %v3255_v2, %v684_v8  ;;  %v889_v24 = vmul.f32 %v3212_v9, %v613_v42 }
 0x157   : > { %1921 = vst [vmem:[%s3007_s24 + $0xf8] sm:$0xff] %v1857_v16  ;;  %v1019_v18 = vmul.f32 %v3230_v17, %v685_v59  ;;  %v1079_v30 = vadd.f32 %v2969_v40, %v949_v43  ;;  %v1148_v49 = vmul.f32 %v3236_v20, %v541_v37  ;;  %v757_v35 = vmul.f32 %v3201_v26, %v542_v23 }
 0x158   : > { %v1469_v27 = vadd.f32 %v3858_v45, %v1339_v14  ;;  %v1278_v29 = vmul.f32 %v3241_v34, %v613_v42  ;;  %v1408_v46 = vmul.f32 %v3245_v44, %v685_v59  ;;  %v1537_v61 = vmul.f32 %v3250_v39, %v541_v37 }
 0x159   : > { %v1211_v38 = vadd.f32 %v1147_v33, %v3859_v53  ;;  %v953_v36 = vadd.f32 %v889_v24, %v823_v10  ;;  %v1210_v8 = vadd.f32 %v2975_v52, %v1079_v30  ;;  %v824_v40 = vadd.f32 %v3208_v51, %v757_v35  ;;  %v688_v35 = vld [vmem:[#allocation2 + $0x22a] sm:$0xff] }
 0x15a   : > { %v1600_v13 = vadd.f32 %v1536_v28, %v1469_v27  ;;  %v1667_v12 = vmul.f32 %v3269_v54, %v613_v42  ;;  %v1797_v50 = vmul.f32 %v3255_v2, %v685_v59  ;;  %v890_v60 = vmul.f32 %v3212_v9, %v614_v25  ;;  %v687_v42 = vld [vmem:[#allocation2 + $0x21a] sm:$0xff] }
 0x15b   : > { %v1341_v31 = vadd.f32 %v1277_v6, %v1211_v38  ;;  %v1340_v48 = vadd.f32 %v1276_v4, %v1210_v8  ;;  %v1020_v37 = vmul.f32 %v3230_v17, %v686_v0  ;;  %v1149_v5 = vmul.f32 %v3236_v20, %v542_v23  ;;  %v544_v6 = vld [vmem:[#allocation2 + $0x228] sm:$0xff]  ;;  %v545_v38 = vld [vmem:[#allocation2 + $0x230] sm:$0xff] }
 0x15c   : > { %v1730_v58 = vadd.f32 %v1666_v57, %v1600_v13  ;;  %v954_v63 = vadd.f32 %v890_v60, %v824_v40  ;;  %v1538_v52 = vmul.f32 %v3250_v39, %v542_v23  ;;  %v758_v56 = vmul.f32 %v3201_v26, %v543_v1  ;;  %v617_v60 = vld [vmem:[#allocation2 + $0x231] sm:$0xff] }
 0x15d   : > { %v1471_v32 = vadd.f32 %v1407_v22, %v1341_v31  ;;  %v1083_v33 = vadd.f32 %v1019_v18, %v953_v36  ;;  %v1470_v41 = vadd.f32 %v3400_v7, %v1340_v48  ;;  %v1279_v19 = vmul.f32 %v3241_v34, %v614_v25  ;;  %v616_v18 = vld [vmem:[#allocation2 + $0x229] sm:$0xff]  ;;  %v689_v48 = vld [vmem:[#allocation2 + $0x232] sm:$0xff] }
 0x15e   : > { %v1860_v11 = vadd.f32 %v1796_v21, %v1730_v58  ;;  %v1668_v59 = vmul.f32 %v3269_v54, %v614_v25  ;;  %v825_v3 = vadd.f32 %v3208_v51, %v758_v56  ;;  %v1212_v16 = vadd.f32 %v1148_v49, %v3860_v62 }
 0x15f   : > { %v1602_v4 = vadd.f32 %v1538_v52, %v1471_v32  ;;  %v1601_v22 = vadd.f32 %v1537_v61, %v1470_v41  ;;  %v1409_v28 = vmul.f32 %v3245_v44, %v686_v0  ;;  %v1798_v23 = vmul.f32 %v3255_v2, %v686_v0 }
 0x160   : > { %1924 = vst [vmem:[%s3007_s24 + $0x110] sm:$0xff] %v1860_v11  ;;  %v891_v55 = vmul.f32 %v3212_v9, %v615_v15  ;;  %v1084_v7 = vadd.f32 %v1020_v37, %v954_v63  ;;  %v1021_v10 = vmul.f32 %v3230_v17, %v687_v42  ;;  %v1342_v43 = vadd.f32 %v1278_v29, %v1212_v16 }
 0x161   : > { %v1732_v14 = vadd.f32 %v1668_v59, %v1602_v4  ;;  %v1731_v57 = vadd.f32 %v1667_v12, %v1601_v22  ;;  %v1150_v24 = vmul.f32 %v3236_v20, %v543_v1  ;;  %v759_v45 = vmul.f32 %v3201_v26, %v544_v6 }
 0x162   : > { %v955_v21 = vadd.f32 %v891_v55, %v825_v3  ;;  %v1280_v30 = vmul.f32 %v3241_v34, %v615_v15  ;;  %v1472_v49 = vadd.f32 %v1408_v46, %v1342_v43  ;;  %v1539_v25 = vmul.f32 %v3250_v39, %v543_v1 }
 0x163   : > { %v1862_v27 = vadd.f32 %v1798_v23, %v1732_v14  ;;  %v1861_v61 = vadd.f32 %v1797_v50, %v1731_v57  ;;  %v1410_v0 = vmul.f32 %v3245_v44, %v687_v42  ;;  %v826_v29 = vadd.f32 %v3208_v51, %v759_v45 }
 0x164   : > { %v1213_v53 = vadd.f32 %v1149_v5, %v3416_v47  ;;  %v1603_v13 = vadd.f32 %v1539_v25, %v1472_v49  ;;  %v1669_v36 = vmul.f32 %v3269_v54, %v615_v15  ;;  %v1799_v8 = vmul.f32 %v3255_v2, %v687_v42  ;;  %v546_v15 = vld [vmem:[#allocation2 + $0x240] sm:$0xff] }
 0x165   : > { %1926 = vst [vmem:[%s3007_s24 + $0x120] sm:$0xff] %v1862_v27  ;;  %v892_v40 = vmul.f32 %v3212_v9, %v616_v18  ;;  %v1085_v46 = vadd.f32 %v1021_v10, %v955_v21  ;;  %v1022_v1 = vmul.f32 %v3230_v17, %v688_v35  ;;  %v1151_v12 = vmul.f32 %v3236_v20, %v544_v6  ;;  %v690_v10 = vld [vmem:[#allocation2 + $0x242] sm:$0xff] }
 0x166   : > { %1925 = vst [vmem:[%s3007_s24 + $0x118] sm:$0xff] %v1861_v61  ;;  %v1343_v50 = vadd.f32 %v1279_v19, %v1213_v53  ;;  %v1733_v31 = vadd.f32 %v1669_v36, %v1603_v13  ;;  %v1281_v47 = vmul.f32 %v3241_v34, %v616_v18  ;;  %v760_v37 = vmul.f32 %v3201_v26, %v545_v38 }
 0x167   : > { %v956_v58 = vadd.f32 %v892_v40, %v826_v29  ;;  %v1411_v5 = vmul.f32 %v3245_v44, %v688_v35  ;;  %v1540_v32 = vmul.f32 %v3250_v39, %v544_v6  ;;  %v1214_v52 = vadd.f32 %v1150_v24, %v1083_v33  ;;  %v618_v33 = vld [vmem:[#allocation2 + $0x241] sm:$0xff]  ;;  %v619_v29 = vld [vmem:[#allocation2 + $0x249] sm:$0xff] }
 0x168   : > { %v1473_v63 = vadd.f32 %v1409_v28, %v1343_v50  ;;  %v1863_v56 = vadd.f32 %v1799_v8, %v1733_v31  ;;  %v1670_v11 = vmul.f32 %v3269_v54, %v616_v18  ;;  %v827_v41 = vadd.f32 %v3208_v51, %v760_v37  ;;  %v547_v18 = vld [vmem:[#allocation2 + $0x248] sm:$0xff]  ;;  %v548_v50 = vld [vmem:[#allocation2 + $0x258] sm:$0xff] }
 0x169   : > { %v893_v19 = vmul.f32 %v3212_v9, %v617_v60  ;;  %v1800_v4 = vmul.f32 %v3255_v2, %v688_v35  ;;  %v1023_v59 = vmul.f32 %v3230_v17, %v689_v48  ;;  %v1344_v3 = vadd.f32 %v1280_v30, %v1214_v52 }
 0x16a   : > { %v1604_v42 = vadd.f32 %v1540_v32, %v1473_v63  ;;  %1927 = vst [vmem:[%s3007_s24 + $0x128] sm:$0xff] %v1863_v56  ;;  %v1086_v62 = vadd.f32 %v1022_v1, %v956_v58  ;;  %v1152_v6 = vmul.f32 %v3236_v20, %v545_v38  ;;  %v761_v22 = vmul.f32 %v3201_v26, %v546_v15 }
 0x16b   : > { %v957_v16 = vadd.f32 %v893_v19, %v827_v41  ;;  %v1282_v23 = vmul.f32 %v3241_v34, %v617_v60  ;;  %v1474_v55 = vadd.f32 %v1410_v0, %v1344_v3  ;;  %v1541_v14 = vmul.f32 %v3250_v39, %v545_v38 }
 0x16c   : > { %v1734_v28 = vadd.f32 %v1670_v11, %v1604_v42  ;;  %v1412_v43 = vmul.f32 %v3245_v44, %v689_v48  ;;  %v1671_v57 = vmul.f32 %v3269_v54, %v617_v60  ;;  %v828_v21 = vadd.f32 %v3208_v51, %v761_v22 }
 0x16d   : > { %v1215_v24 = vadd.f32 %v1151_v12, %v1084_v7  ;;  %v1605_v27 = vadd.f32 %v1541_v14, %v1474_v55  ;;  %v1801_v30 = vmul.f32 %v3255_v2, %v689_v48  ;;  %v894_v49 = vmul.f32 %v3212_v9, %v618_v33  ;;  %v691_v7 = vld [vmem:[#allocation2 + $0x24a] sm:$0xff] }
 0x16e   : > { %v1864_v45 = vadd.f32 %v1800_v4, %v1734_v28  ;;  %v1087_v25 = vadd.f32 %v1023_v59, %v957_v16  ;;  %v1024_v35 = vmul.f32 %v3230_v17, %v690_v10  ;;  %v1153_v61 = vmul.f32 %v3236_v20, %v546_v15  ;;  %v692_v4 = vld [vmem:[#allocation2 + $0x25a] sm:$0xff] }
 0x16f   : > { %v1345_v0 = vadd.f32 %v1281_v47, %v1215_v24  ;;  %v1735_v53 = vadd.f32 %v1671_v57, %v1605_v27  ;;  %v958_v38 = vadd.f32 %v894_v49, %v828_v21  ;;  %v1283_v13 = vmul.f32 %v3241_v34, %v618_v33  ;;  %v621_v57 = vld [vmem:[#allocation2 + $0x261] sm:$0xff] }
 0x170   : > { %1928 = vst [vmem:[%s3007_s24 + $0x130] sm:$0xff] %v1864_v45  ;;  %v762_v36 = vmul.f32 %v3201_v26, %v547_v18  ;;  %v1413_v8 = vmul.f32 %v3245_v44, %v690_v10  ;;  %v1542_v1 = vmul.f32 %v3250_v39, %v546_v15  ;;  %v1216_v12 = vadd.f32 %v1152_v6, %v1085_v46  ;;  %v620_v46 = vld [vmem:[#allocation2 + $0x259] sm:$0xff]  ;;  %v693_v24 = vld [vmem:[#allocation2 + $0x262] sm:$0xff] }
 0x171   : > { %v1475_v40 = vadd.f32 %v1411_v5, %v1345_v0  ;;  %v1865_v60 = vadd.f32 %v1801_v30, %v1735_v53  ;;  %v1672_v31 = vmul.f32 %v3269_v54, %v618_v33  ;;  %v895_v47 = vmul.f32 %v3212_v9, %v619_v29  ;;  %v549_v33 = vld [vmem:[#allocation2 + $0x260] sm:$0xff] }
 0x172   : > { %v829_v58 = vadd.f32 %v3208_v51, %v762_v36  ;;  %v1802_v37 = vmul.f32 %v3255_v2, %v690_v10  ;;  %v1025_v63 = vmul.f32 %v3230_v17, %v691_v7  ;;  %v1346_v32 = vadd.f32 %v1282_v23, %v1216_v12 }
 0x173   : > { %v1606_v48 = vadd.f32 %v1542_v1, %v1475_v40  ;;  %1929 = vst [vmem:[%s3007_s24 + $0x138] sm:$0xff] %v1865_v60  ;;  %v1088_v52 = vadd.f32 %v1024_v35, %v958_v38  ;;  %v1154_v15 = vmul.f32 %v3236_v20, %v547_v18  ;;  %v763_v56 = vmul.f32 %v3201_v26, %v548_v50  ;;  %v550_v35 = vld [vmem:[#allocation2 + $0x270] sm:$0xff]  ;;  %v3526_v38 = vld [vmem:[%s2563_s27 + $0x1] ss:$0 sm:$0xff] }
 0x174   : > { %v959_v5 = vadd.f32 %v895_v47, %v829_v58  ;;  %v1284_v41 = vmul.f32 %v3241_v34, %v619_v29  ;;  %v1476_v19 = vadd.f32 %v1412_v43, %v1346_v32  ;;  %v1543_v42 = vmul.f32 %v3250_v39, %v547_v18  ;;  %v3515_v18 = vld [vmem:[%s2563_s27] ss:$0 sm:$0xff] }
 0x175   : > { %v1736_v11 = vadd.f32 %v1672_v31, %v1606_v48  ;;  %v1414_v59 = vmul.f32 %v3245_v44, %v691_v7  ;;  %v1673_v3 = vmul.f32 %v3269_v54, %v619_v29  ;;  %v830_v16 = vadd.f32 %v3208_v51, %v763_v56  ;;  %v3522_v29 = vld [vmem:[%s2588_s18] ss:$0 sm:$0xff] }
 0x176   : > { %v1217_v6 = vadd.f32 %v1153_v61, %v1086_v62  ;;  %v1607_v28 = vadd.f32 %v1543_v42, %v1476_v19  ;;  %v1803_v26 = vmul.f32 %v3255_v2, %v691_v7  ;;  %v896_v23 = vmul.f32 %v3212_v9, %v620_v46  ;;  %v623_v42 = vld [vmem:[#allocation2 + $0x279] sm:$0xff] }
 0x177   : > { %v1866_v22 = vadd.f32 %v1802_v37, %v1736_v11  ;;  %v3508_v55 = vadd.f32 %v1025_v63, %v959_v5  ;;  %v1026_v14 = vmul.f32 %v3230_v17, %v692_v4  ;;  %v1155_v10 = vmul.f32 %v3236_v20, %v548_v50  ;;  %v694_v37 = vld [vmem:[#allocation2 + $0x272] sm:$0xff] }
 0x178   : > { %v1347_v43 = vadd.f32 %v1283_v13, %v1217_v6  ;;  %v1737_v51 = vadd.f32 %v1673_v3, %v1607_v28  ;;  %v960_v62 = vadd.f32 %v896_v23, %v830_v16  ;;  %v1285_v21 = vmul.f32 %v3241_v34, %v620_v46  ;;  %v551_v5 = vld [vmem:[#allocation2 + $0x278] sm:$0xff] }
 0x179   : > { %1930 = vst [vmem:[%s3007_s24 + $0x140] sm:$0xff] %v1866_v22  ;;  %v764_v9 = vmul.f32 %v3515_v18, %v549_v33  ;;  %v1415_v45 = vmul.f32 %v3245_v44, %v692_v4  ;;  %v1544_v30 = vmul.f32 %v3250_v39, %v548_v50  ;;  %v1218_v49 = vadd.f32 %v1154_v15, %v1087_v25  ;;  %v622_v50 = vld [vmem:[#allocation2 + $0x271] sm:$0xff]  ;;  %v695_v16 = vld [vmem:[#allocation2 + $0x27a] sm:$0xff] }
 0x17a   : > { %v1477_v27 = vadd.f32 %v1413_v8, %v1347_v43  ;;  %v1867_v61 = vadd.f32 %v1803_v26, %v1737_v51  ;;  %v1674_v0 = vmul.f32 %v3269_v54, %v620_v46  ;;  %v897_v13 = vmul.f32 %v3526_v38, %v621_v57  ;;  %v3564_v26 = vld [vmem:[%s2563_s27 + $0x8] ss:$0 sm:$0xff] }
 0x17b   : > { %v831_v53 = vadd.f32 %v3522_v29, %v764_v9  ;;  %v1804_v36 = vmul.f32 %v3255_v2, %v692_v4  ;;  %v1027_v8 = vmul.f32 %v3230_v17, %v693_v24  ;;  %v1348_v40 = vadd.f32 %v1284_v41, %v1218_v49  ;;  %v3550_v41 = vld [vmem:[%s2563_s27 + $0x4] ss:$0 sm:$0xff] }
 0x17c   : > { %v1608_v7 = vadd.f32 %v1544_v30, %v1477_v27  ;;  %1931 = vst [vmem:[%s3007_s24 + $0x148] sm:$0xff] %v1867_v61  ;;  %v3532_v25 = vadd.f32 %v1026_v14, %v960_v62  ;;  %v1156_v12 = vmul.f32 %v3236_v20, %v549_v33  ;;  %v765_v60 = vmul.f32 %v3515_v18, %v550_v35 }
 0x17d   : > { %v961_v1 = vadd.f32 %v897_v13, %v831_v53  ;;  %v1286_v58 = vmul.f32 %v3241_v34, %v621_v57  ;;  %v1478_v47 = vadd.f32 %v1414_v59, %v1348_v40  ;;  %v1545_v48 = vmul.f32 %v3250_v39, %v549_v33  ;;  %v3546_v39 = vld [vmem:[%s2563_s27 + $0x2] ss:$0 sm:$0xff]  ;;  %v3560_v33 = vld [vmem:[%s2563_s27 + $0x6] ss:$0 sm:$0xff] }
 0x17e   : > { %v1738_v31 = vadd.f32 %v1674_v0, %v1608_v7  ;;  %v1416_v17 = vmul.f32 %v3245_v44, %v693_v24  ;;  %v1675_v63 = vmul.f32 %v3269_v54, %v621_v57  ;;  %v832_v32 = vadd.f32 %v3522_v29, %v765_v60  ;;  %v696_v7 = vld [vmem:[#allocation2 + $0x28a] sm:$0xff] }
 0x17f   : > { %v1219_v20 = vadd.f32 %v1155_v10, %v1088_v52  ;;  %v1609_v46 = vadd.f32 %v1545_v48, %v1478_v47  ;;  %v1805_v56 = vmul.f32 %v3255_v2, %v693_v24  ;;  %v898_v34 = vmul.f32 %v3526_v38, %v622_v50  ;;  %v3555_v2 = vld [vmem:[%s2563_s27 + $0x5] ss:$0 sm:$0xff]  ;;  %v552_v10 = vld [vmem:[#allocation2 + $0x288] sm:$0xff] }
 0x180   : > { %v1868_v15 = vadd.f32 %v1804_v36, %v1738_v31  ;;  %v3543_v11 = vadd.f32 %v1027_v8, %v961_v1  ;;  %v1028_v44 = vmul.f32 %v3546_v39, %v694_v37  ;;  %v1157_v52 = vmul.f32 %v3550_v41, %v550_v35  ;;  %v3572_v24 = vld [vmem:[%s2563_s27 + $0xa] ss:$0 sm:$0xff]  ;;  %v3583_v8 = vld [vmem:[%s2563_s27 + $0x9] ss:$0 sm:$0xff] }
 0x181   : > { %v1349_v19 = vadd.f32 %v1285_v21, %v1219_v20  ;;  %v1739_v4 = vadd.f32 %v1675_v63, %v1609_v46  ;;  %v962_v59 = vadd.f32 %v898_v34, %v832_v32  ;;  %v1287_v3 = vmul.f32 %v3555_v2, %v622_v50  ;;  %v625_v32 = vld [vmem:[#allocation2 + $0x291] sm:$0xff] }
 0x182   : > { %1932 = vst [vmem:[%s3007_s24 + $0x150] sm:$0xff] %v1868_v15  ;;  %v766_v6 = vmul.f32 %v3515_v18, %v551_v5  ;;  %v1417_v22 = vmul.f32 %v3560_v33, %v694_v37  ;;  %v1546_v23 = vmul.f32 %v3564_v26, %v550_v35  ;;  %v1220_v14 = vadd.f32 %v1156_v12, %v3508_v55  ;;  %v624_v35 = vld [vmem:[#allocation2 + $0x289] sm:$0xff] }
 0x183   : > { %v1479_v28 = vadd.f32 %v1415_v45, %v1349_v19  ;;  %v1869_v43 = vadd.f32 %v1805_v56, %v1739_v4  ;;  %v1676_v57 = vmul.f32 %v3269_v54, %v622_v50  ;;  %v899_v62 = vmul.f32 %v3526_v38, %v623_v42  ;;  %v553_v50 = vld [vmem:[#allocation2 + $0x290] sm:$0xff]  ;;  %v554_v19 = vld [vmem:[#allocation2 + $0x2a0] sm:$0xff] }
 0x184   : > { %v833_v51 = vadd.f32 %v3522_v29, %v766_v6  ;;  %v1806_v9 = vmul.f32 %v3572_v24, %v694_v37  ;;  %v1029_v45 = vmul.f32 %v3546_v39, %v695_v16  ;;  %v1350_v27 = vadd.f32 %v1286_v58, %v1220_v14 }
 0x185   : > { %v1610_v21 = vadd.f32 %v1546_v23, %v1479_v28  ;;  %1933 = vst [vmem:[%s3007_s24 + $0x158] sm:$0xff] %v1869_v43  ;;  %v1092_v30 = vadd.f32 %v1028_v44, %v962_v59  ;;  %v1158_v49 = vmul.f32 %v3550_v41, %v551_v5  ;;  %v767_v54 = vmul.f32 %v3515_v18, %v552_v10 }
 0x186   : > { %v963_v55 = vadd.f32 %v899_v62, %v833_v51  ;;  %v1288_v0 = vmul.f32 %v3555_v2, %v623_v42  ;;  %v1480_v53 = vadd.f32 %v1416_v17, %v1350_v27  ;;  %v1547_v13 = vmul.f32 %v3564_v26, %v551_v5 }
 0x187   : > { %v1740_v61 = vadd.f32 %v1676_v57, %v1610_v21  ;;  %v1418_v36 = vmul.f32 %v3560_v33, %v695_v16  ;;  %v1677_v40 = vmul.f32 %v3583_v8, %v623_v42  ;;  %v834_v1 = vadd.f32 %v3522_v29, %v767_v54 }
 0x188   : > { %v1221_v12 = vadd.f32 %v1157_v52, %v3532_v25  ;;  %v1611_v31 = vadd.f32 %v1547_v13, %v1480_v53  ;;  %v1807_v58 = vmul.f32 %v3572_v24, %v695_v16  ;;  %v900_v47 = vmul.f32 %v3526_v38, %v624_v35  ;;  %v697_v25 = vld [vmem:[#allocation2 + $0x292] sm:$0xff] }
 0x189   : > { %v1870_v60 = vadd.f32 %v1806_v9, %v1740_v61  ;;  %v1093_v48 = vadd.f32 %v1029_v45, %v963_v55  ;;  %v1030_v37 = vmul.f32 %v3546_v39, %v696_v7  ;;  %v1159_v17 = vmul.f32 %v3550_v41, %v552_v10  ;;  %v698_v9 = vld [vmem:[#allocation2 + $0x2a2] sm:$0xff] }
 0x18a   : > { %v1351_v63 = vadd.f32 %v1287_v3, %v1221_v12  ;;  %v1741_v20 = vadd.f32 %v1677_v40, %v1611_v31  ;;  %v964_v5 = vadd.f32 %v900_v47, %v834_v1  ;;  %v1289_v15 = vmul.f32 %v3555_v2, %v624_v35  ;;  %v627_v1 = vld [vmem:[#allocation2 + $0x2a9] sm:$0xff] }
 0x18b   : > { %1934 = vst [vmem:[%s3007_s24 + $0x160] sm:$0xff] %v1870_v60  ;;  %v768_v46 = vmul.f32 %v3515_v18, %v553_v50  ;;  %v1419_v56 = vmul.f32 %v3560_v33, %v696_v7  ;;  %v1548_v44 = vmul.f32 %v3564_v26, %v552_v10  ;;  %v1222_v52 = vadd.f32 %v1158_v49, %v3543_v11  ;;  %v626_v11 = vld [vmem:[#allocation2 + $0x2a1] sm:$0xff] }
 0x18c   : > { %v1481_v34 = vadd.f32 %v1417_v22, %v1351_v63  ;;  %v1871_v42 = vadd.f32 %v1807_v58, %v1741_v20  ;;  %v1678_v4 = vmul.f32 %v3583_v8, %v624_v35  ;;  %v901_v3 = vmul.f32 %v3526_v38, %v625_v32  ;;  %v555_v35 = vld [vmem:[#allocation2 + $0x2a8] sm:$0xff]  ;;  %v556_v63 = vld [vmem:[#allocation2 + $0x2b8] sm:$0xff] }
 0x18d   : > { %v835_v59 = vadd.f32 %v3522_v29, %v768_v46  ;;  %v1808_v6 = vmul.f32 %v3572_v24, %v696_v7  ;;  %v1031_v28 = vmul.f32 %v3546_v39, %v697_v25  ;;  %v1352_v23 = vadd.f32 %v1288_v0, %v1222_v52 }
 0x18e   : > { %v1612_v16 = vadd.f32 %v1548_v44, %v1481_v34  ;;  %1935 = vst [vmem:[%s3007_s24 + $0x168] sm:$0xff] %v1871_v42  ;;  %v1094_v22 = vadd.f32 %v1030_v37, %v964_v5  ;;  %v1160_v10 = vmul.f32 %v3550_v41, %v553_v50  ;;  %v769_v43 = vmul.f32 %v3515_v18, %v554_v19 }
 0x18f   : > { %v965_v14 = vadd.f32 %v901_v3, %v835_v59  ;;  %v1290_v51 = vmul.f32 %v3555_v2, %v625_v32  ;;  %v1482_v62 = vadd.f32 %v1418_v36, %v1352_v23  ;;  %v1549_v21 = vmul.f32 %v3564_v26, %v553_v50 }
 0x190   : > { %v1742_v57 = vadd.f32 %v1678_v4, %v1612_v16  ;;  %v1420_v45 = vmul.f32 %v3560_v33, %v697_v25  ;;  %v1679_v27 = vmul.f32 %v3583_v8, %v625_v32  ;;  %v836_v55 = vadd.f32 %v3522_v29, %v769_v43 }
 0x191   : > { %v1223_v49 = vadd.f32 %v1159_v17, %v1092_v30  ;;  %v1613_v61 = vadd.f32 %v1549_v21, %v1482_v62  ;;  %v1809_v0 = vmul.f32 %v3572_v24, %v697_v25  ;;  %v902_v53 = vmul.f32 %v3526_v38, %v626_v11  ;;  %v699_v30 = vld [vmem:[#allocation2 + $0x2aa] sm:$0xff] }
 0x192   : > { %v1872_v54 = vadd.f32 %v1808_v6, %v1742_v57  ;;  %v1095_v13 = vadd.f32 %v1031_v28, %v965_v14  ;;  %v1032_v7 = vmul.f32 %v3546_v39, %v698_v9  ;;  %v1161_v36 = vmul.f32 %v3550_v41, %v554_v19  ;;  %v700_v6 = vld [vmem:[#allocation2 + $0x2ba] sm:$0xff] }
 0x193   : > { %v1353_v40 = vadd.f32 %v1289_v15, %v1223_v49  ;;  %v1743_v12 = vadd.f32 %v1679_v27, %v1613_v61  ;;  %v966_v50 = vadd.f32 %v902_v53, %v836_v55  ;;  %v1291_v60 = vmul.f32 %v3555_v2, %v626_v11  ;;  %v629_v55 = vld [vmem:[#allocation2 + $0x2c1] sm:$0xff] }
 0x194   : > { %1936 = vst [vmem:[%s3007_s24 + $0x170] sm:$0xff] %v1872_v54  ;;  %v770_v31 = vmul.f32 %v3515_v18, %v555_v35  ;;  %v1421_v58 = vmul.f32 %v3560_v33, %v698_v9  ;;  %v1550_v37 = vmul.f32 %v3564_v26, %v554_v19  ;;  %v1224_v17 = vadd.f32 %v1160_v10, %v1093_v48  ;;  %v628_v48 = vld [vmem:[#allocation2 + $0x2b9] sm:$0xff] }
 0x195   : > { %v1483_v47 = vadd.f32 %v1419_v56, %v1353_v40  ;;  %v1873_v32 = vadd.f32 %v1809_v0, %v1743_v12  ;;  %v1680_v20 = vmul.f32 %v3583_v8, %v626_v11  ;;  %v903_v15 = vmul.f32 %v3526_v38, %v627_v1  ;;  %v557_v11 = vld [vmem:[#allocation2 + $0x2c0] sm:$0xff]  ;;  %v558_v40 = vld [vmem:[#allocation2 + $0x2d0] sm:$0xff] }
 0x196   : > { %v837_v5 = vadd.f32 %v3522_v29, %v770_v31  ;;  %v1810_v46 = vmul.f32 %v3572_v24, %v698_v9  ;;  %v1033_v34 = vmul.f32 %v3546_v39, %v699_v30  ;;  %v1354_v44 = vadd.f32 %v1290_v51, %v1224_v17 }
 0x197   : > { %v1614_v25 = vadd.f32 %v1550_v37, %v1483_v47  ;;  %1937 = vst [vmem:[%s3007_s24 + $0x178] sm:$0xff] %v1873_v32  ;;  %v1096_v52 = vadd.f32 %v1032_v7, %v966_v50  ;;  %v1162_v19 = vmul.f32 %v3550_v41, %v555_v35  ;;  %v771_v42 = vmul.f32 %v3515_v18, %v556_v63 }
 0x198   : > { %v967_v56 = vadd.f32 %v903_v15, %v837_v5  ;;  %v1292_v59 = vmul.f32 %v3555_v2, %v627_v1  ;;  %v1484_v3 = vadd.f32 %v1420_v45, %v1354_v44  ;;  %v1551_v16 = vmul.f32 %v3564_v26, %v555_v35 }
 0x199   : > { %v1744_v4 = vadd.f32 %v1680_v20, %v1614_v25  ;;  %v1422_v28 = vmul.f32 %v3560_v33, %v699_v30  ;;  %v1681_v23 = vmul.f32 %v3583_v8, %v627_v1  ;;  %v838_v14 = vadd.f32 %v3522_v29, %v771_v42 }
 0x19a   : > { %v1225_v10 = vadd.f32 %v1161_v36, %v1094_v22  ;;  %v1615_v57 = vadd.f32 %v1551_v16, %v1484_v3  ;;  %v1811_v51 = vmul.f32 %v3572_v24, %v699_v30  ;;  %v904_v62 = vmul.f32 %v3526_v38, %v628_v48  ;;  %v701_v22 = vld [vmem:[#allocation2 + $0x2c2] sm:$0xff] }
 0x19b   : > { %v1874_v43 = vadd.f32 %v1810_v46, %v1744_v4  ;;  %v1097_v21 = vadd.f32 %v1033_v34, %v967_v56  ;;  %v1034_v9 = vmul.f32 %v3546_v39, %v700_v6  ;;  %v1163_v45 = vmul.f32 %v3550_v41, %v556_v63  ;;  %v702_v46 = vld [vmem:[#allocation2 + $0x2d2] sm:$0xff] }
 0x19c   : > { %v1355_v27 = vadd.f32 %v1291_v60, %v1225_v10  ;;  %v1745_v49 = vadd.f32 %v1681_v23, %v1615_v57  ;;  %v968_v35 = vadd.f32 %v904_v62, %v838_v14  ;;  %v1293_v54 = vmul.f32 %v3555_v2, %v628_v48  ;;  %v631_v14 = vld [vmem:[#allocation2 + $0x2d9] sm:$0xff] }
 0x19d   : > { %1938 = vst [vmem:[%s3007_s24 + $0x180] sm:$0xff] %v1874_v43  ;;  %v772_v61 = vmul.f32 %v3515_v18, %v557_v11  ;;  %v1423_v0 = vmul.f32 %v3560_v33, %v700_v6  ;;  %v1552_v7 = vmul.f32 %v3564_v26, %v556_v63  ;;  %v1226_v36 = vadd.f32 %v1162_v19, %v1095_v13  ;;  %v630_v13 = vld [vmem:[#allocation2 + $0x2d1] sm:$0xff] }
 0x19e   : > { %v1485_v53 = vadd.f32 %v1421_v58, %v1355_v27  ;;  %v1875_v1 = vadd.f32 %v1811_v51, %v1745_v49  ;;  %v1682_v12 = vmul.f32 %v3583_v8, %v628_v48  ;;  %v905_v60 = vmul.f32 %v3526_v38, %v629_v55  ;;  %v559_v48 = vld [vmem:[#allocation2 + $0x2d8] sm:$0xff]  ;;  %v560_v27 = vld [vmem:[#allocation2 + $0x2e8] sm:$0xff] }
 0x19f   : > { %v839_v50 = vadd.f32 %v3522_v29, %v772_v61  ;;  %v1812_v31 = vmul.f32 %v3572_v24, %v700_v6  ;;  %v1035_v47 = vmul.f32 %v3546_v39, %v701_v22  ;;  %v1356_v37 = vadd.f32 %v1292_v59, %v1226_v36 }
 0x1a0   : > { %v1616_v30 = vadd.f32 %v1552_v7, %v1485_v53  ;;  %1939 = vst [vmem:[%s3007_s24 + $0x188] sm:$0xff] %v1875_v1  ;;  %v1098_v17 = vadd.f32 %v1034_v9, %v968_v35  ;;  %v1164_v63 = vmul.f32 %v3550_v41, %v557_v11  ;;  %v773_v32 = vmul.f32 %v3515_v18, %v558_v40 }
 0x1a1   : > { %v969_v58 = vadd.f32 %v905_v60, %v839_v50  ;;  %v1294_v5 = vmul.f32 %v3555_v2, %v629_v55  ;;  %v1486_v15 = vadd.f32 %v1422_v28, %v1356_v37  ;;  %v1553_v25 = vmul.f32 %v3564_v26, %v557_v11 }
 0x1a2   : > { %v1746_v20 = vadd.f32 %v1682_v12, %v1616_v30  ;;  %v1424_v34 = vmul.f32 %v3560_v33, %v701_v22  ;;  %v1683_v44 = vmul.f32 %v3583_v8, %v629_v55  ;;  %v840_v56 = vadd.f32 %v3522_v29, %v773_v32 }
 0x1a3   : > { %v1227_v19 = vadd.f32 %v1163_v45, %v1096_v52  ;;  %v1617_v4 = vadd.f32 %v1553_v25, %v1486_v15  ;;  %v1813_v59 = vmul.f32 %v3572_v24, %v701_v22  ;;  %v906_v3 = vmul.f32 %v3526_v38, %v630_v13  ;;  %v703_v52 = vld [vmem:[#allocation2 + $0x2da] sm:$0xff] }
 0x1a4   : > { %v1876_v42 = vadd.f32 %v1812_v31, %v1746_v20  ;;  %v1099_v16 = vadd.f32 %v1035_v47, %v969_v58  ;;  %v1036_v6 = vmul.f32 %v3546_v39, %v702_v46  ;;  %v1165_v28 = vmul.f32 %v3550_v41, %v558_v40  ;;  %v704_v31 = vld [vmem:[#allocation2 + $0x2ea] sm:$0xff] }
 0x1a5   : > { %v1357_v23 = vadd.f32 %v1293_v54, %v1227_v19  ;;  %v1747_v10 = vadd.f32 %v1683_v44, %v1617_v4  ;;  %v970_v11 = vadd.f32 %v906_v3, %v840_v56  ;;  %v1295_v43 = vmul.f32 %v3555_v2, %v630_v13  ;;  %v633_v56 = vld [vmem:[#allocation2 + $0x2f1] sm:$0xff] }
 0x1a6   : > { %1940 = vst [vmem:[%s3007_s24 + $0x190] sm:$0xff] %v1876_v42  ;;  %v774_v57 = vmul.f32 %v3515_v18, %v559_v48  ;;  %v1425_v51 = vmul.f32 %v3560_v33, %v702_v46  ;;  %v1554_v9 = vmul.f32 %v3564_v26, %v558_v40  ;;  %v1228_v45 = vadd.f32 %v1164_v63, %v1097_v21  ;;  %v632_v21 = vld [vmem:[#allocation2 + $0x2e9] sm:$0xff] }
 0x1a7   : > { %v1487_v62 = vadd.f32 %v1423_v0, %v1357_v23  ;;  %v1877_v55 = vadd.f32 %v1813_v59, %v1747_v10  ;;  %v1684_v49 = vmul.f32 %v3583_v8, %v630_v13  ;;  %v907_v54 = vmul.f32 %v3526_v38, %v631_v14  ;;  %v561_v13 = vld [vmem:[#allocation2 + $0x2f0] sm:$0xff]  ;;  %v562_v23 = vld [vmem:[#allocation2 + $0x300] sm:$0xff] }
 0x1a8   : > { %v841_v35 = vadd.f32 %v3522_v29, %v774_v57  ;;  %v1814_v61 = vmul.f32 %v3572_v24, %v702_v46  ;;  %v1037_v53 = vmul.f32 %v3546_v39, %v703_v52  ;;  %v1358_v7 = vadd.f32 %v1294_v5, %v1228_v45 }
 0x1a9   : > { %v1618_v22 = vadd.f32 %v1554_v9, %v1487_v62  ;;  %1941 = vst [vmem:[%s3007_s24 + $0x198] sm:$0xff] %v1877_v55  ;;  %v1100_v36 = vadd.f32 %v1036_v6, %v970_v11  ;;  %v1166_v40 = vmul.f32 %v3550_v41, %v559_v48  ;;  %v775_v1 = vmul.f32 %v3515_v18, %v560_v27 }
 0x1aa   : > { %v971_v0 = vadd.f32 %v907_v54, %v841_v35  ;;  %v1296_v50 = vmul.f32 %v3555_v2, %v631_v14  ;;  %v1488_v60 = vadd.f32 %v1424_v34, %v1358_v7  ;;  %v1555_v30 = vmul.f32 %v3564_v26, %v559_v48 }
 0x1ab   : > { %v1748_v12 = vadd.f32 %v1684_v49, %v1618_v22  ;;  %v1426_v47 = vmul.f32 %v3560_v33, %v703_v52  ;;  %v1685_v37 = vmul.f32 %v3583_v8, %v631_v14  ;;  %v842_v58 = vadd.f32 %v3522_v29, %v775_v1 }
 0x1ac   : > { %v1229_v63 = vadd.f32 %v1165_v28, %v1098_v17  ;;  %v1619_v20 = vadd.f32 %v1555_v30, %v1488_v60  ;;  %v1815_v5 = vmul.f32 %v3572_v24, %v703_v52  ;;  %v908_v15 = vmul.f32 %v3526_v38, %v632_v21  ;;  %v705_v17 = vld [vmem:[#allocation2 + $0x2f2] sm:$0xff] }
 0x1ad   : > { %v1878_v32 = vadd.f32 %v1814_v61, %v1748_v12  ;;  %v1101_v25 = vadd.f32 %v1037_v53, %v971_v0  ;;  %v1038_v46 = vmul.f32 %v3546_v39, %v704_v31  ;;  %v1167_v34 = vmul.f32 %v3550_v41, %v560_v27  ;;  %v706_v61 = vld [vmem:[#allocation2 + $0x302] sm:$0xff] }
 0x1ae   : > { %v1359_v44 = vadd.f32 %v1295_v43, %v1229_v63  ;;  %v1749_v19 = vadd.f32 %v1685_v37, %v1619_v20  ;;  %v972_v48 = vadd.f32 %v908_v15, %v842_v58  ;;  %v1297_v42 = vmul.f32 %v3555_v2, %v632_v21  ;;  %v635_v58 = vld [vmem:[#allocation2 + $0x309] sm:$0xff] }
 0x1af   : > { %1942 = vst [vmem:[%s3007_s24 + $0x1a0] sm:$0xff] %v1878_v32  ;;  %v776_v4 = vmul.f32 %v3515_v18, %v561_v13  ;;  %v1427_v59 = vmul.f32 %v3560_v33, %v704_v31  ;;  %v1556_v6 = vmul.f32 %v3564_v26, %v560_v27  ;;  %v1230_v28 = vadd.f32 %v1166_v40, %v1099_v16  ;;  %v634_v16 = vld [vmem:[#allocation2 + $0x301] sm:$0xff] }
 0x1b0   : > { %v1489_v3 = vadd.f32 %v1425_v51, %v1359_v44  ;;  %v1879_v14 = vadd.f32 %v1815_v5, %v1749_v19  ;;  %v1686_v10 = vmul.f32 %v3583_v8, %v632_v21  ;;  %v909_v43 = vmul.f32 %v3526_v38, %v633_v56  ;;  %v563_v21 = vld [vmem:[#allocation2 + $0x308] sm:$0xff]  ;;  %v564_v44 = vld [vmem:[#allocation2 + $0x318] sm:$0xff] }
 0x1b1   : > { %v843_v11 = vadd.f32 %v3522_v29, %v776_v4  ;;  %v1816_v57 = vmul.f32 %v3572_v24, %v704_v31  ;;  %v1039_v62 = vmul.f32 %v3546_v39, %v705_v17  ;;  %v1360_v9 = vadd.f32 %v1296_v50, %v1230_v28 }
 0x1b2   : > { %v1620_v52 = vadd.f32 %v1556_v6, %v1489_v3  ;;  %1943 = vst [vmem:[%s3007_s24 + $0x1a8] sm:$0xff] %v1879_v14  ;;  %v1102_v45 = vadd.f32 %v1038_v46, %v972_v48  ;;  %v1168_v27 = vmul.f32 %v3550_v41, %v561_v13  ;;  %v777_v55 = vmul.f32 %v3515_v18, %v562_v23 }
 0x1b3   : > { %v973_v51 = vadd.f32 %v909_v43, %v843_v11  ;;  %v1298_v35 = vmul.f32 %v3555_v2, %v633_v56  ;;  %v1490_v54 = vadd.f32 %v1426_v47, %v1360_v9  ;;  %v1557_v22 = vmul.f32 %v3564_v26, %v561_v13 }
 0x1b4   : > { %v1750_v49 = vadd.f32 %v1686_v10, %v1620_v52  ;;  %v1428_v53 = vmul.f32 %v3560_v33, %v705_v17  ;;  %v1687_v7 = vmul.f32 %v3583_v8, %v633_v56  ;;  %v844_v0 = vadd.f32 %v3522_v29, %v777_v55 }
 0x1b5   : > { %v1231_v40 = vadd.f32 %v1167_v34, %v1100_v36  ;;  %v1621_v12 = vadd.f32 %v1557_v22, %v1490_v54  ;;  %v1817_v50 = vmul.f32 %v3572_v24, %v705_v17  ;;  %v910_v60 = vmul.f32 %v3526_v38, %v634_v16  ;;  %v707_v36 = vld [vmem:[#allocation2 + $0x30a] sm:$0xff] }
 0x1b6   : > { %v1880_v1 = vadd.f32 %v1816_v57, %v1750_v49  ;;  %v1103_v30 = vadd.f32 %v1039_v62, %v973_v51  ;;  %v1040_v31 = vmul.f32 %v3546_v39, %v706_v61  ;;  %v1169_v47 = vmul.f32 %v3550_v41, %v562_v23  ;;  %v708_v57 = vld [vmem:[#allocation2 + $0x31a] sm:$0xff] }
 0x1b7   : > { %v1361_v37 = vadd.f32 %v1297_v42, %v1231_v40  ;;  %v1751_v63 = vadd.f32 %v1687_v7, %v1621_v12  ;;  %v974_v13 = vadd.f32 %v910_v60, %v844_v0  ;;  %v1299_v32 = vmul.f32 %v3555_v2, %v634_v16  ;;  %v637_v0 = vld [vmem:[#allocation2 + $0x321] sm:$0xff] }
 0x1b8   : > { %1944 = vst [vmem:[%s3007_s24 + $0x1b0] sm:$0xff] %v1880_v1  ;;  %v778_v20 = vmul.f32 %v3515_v18, %v563_v21  ;;  %v1429_v5 = vmul.f32 %v3560_v33, %v706_v61  ;;  %v1558_v46 = vmul.f32 %v3564_v26, %v562_v23  ;;  %v1232_v34 = vadd.f32 %v1168_v27, %v1101_v25  ;;  %v636_v25 = vld [vmem:[#allocation2 + $0x319] sm:$0xff] }
 0x1b9   : > { %v1491_v15 = vadd.f32 %v1427_v59, %v1361_v37  ;;  %v1881_v56 = vadd.f32 %v1817_v50, %v1751_v63  ;;  %v1688_v19 = vmul.f32 %v3583_v8, %v634_v16  ;;  %v911_v42 = vmul.f32 %v3526_v38, %v635_v58  ;;  %v565_v16 = vld [vmem:[#allocation2 + $0x320] sm:$0xff] }
 0x1ba   : > { %v845_v48 = vadd.f32 %v3522_v29, %v778_v20  ;;  %v1818_v4 = vmul.f32 %v3572_v24, %v706_v61  ;;  %v1041_v3 = vmul.f32 %v3546_v39, %v707_v36  ;;  %v1362_v6 = vadd.f32 %v1298_v35, %v1232_v34 }
 0x1bb   : > { %v1622_v17 = vadd.f32 %v1558_v46, %v1491_v15  ;;  %1945 = vst [vmem:[%s3007_s24 + $0x1b8] sm:$0xff] %v1881_v56  ;;  %v1104_v28 = vadd.f32 %v1040_v31, %v974_v13  ;;  %v1170_v23 = vmul.f32 %v3550_v41, %v563_v21  ;;  %v779_v14 = vmul.f32 %v3515_v18, %v564_v44 }
 0x1bc   : > { %v975_v59 = vadd.f32 %v911_v42, %v845_v48  ;;  %v1300_v11 = vmul.f32 %v3555_v2, %v635_v58  ;;  %v1492_v43 = vadd.f32 %v1428_v53, %v1362_v6  ;;  %v1559_v52 = vmul.f32 %v3564_v26, %v563_v21  ;;  %v638_v42 = vld [vmem:[#allocation2 + $0x331] sm:$0xff] }
 0x1bd   : > { %v1752_v10 = vadd.f32 %v1688_v19, %v1622_v17  ;;  %v1430_v62 = vmul.f32 %v3560_v33, %v707_v36  ;;  %v1689_v9 = vmul.f32 %v3583_v8, %v635_v58  ;;  %v846_v51 = vadd.f32 %v3522_v29, %v779_v14  ;;  %v710_v17 = vld [vmem:[#allocation2 + $0x332] sm:$0xff] }
 0x1be   : > { %v1233_v27 = vadd.f32 %v1169_v47, %v1102_v45  ;;  %v1623_v49 = vadd.f32 %v1559_v52, %v1492_v43  ;;  %v1819_v35 = vmul.f32 %v3572_v24, %v707_v36  ;;  %v912_v54 = vmul.f32 %v3526_v38, %v636_v25  ;;  %v709_v45 = vld [vmem:[#allocation2 + $0x322] sm:$0xff] }
 0x1bf   : > { %v1882_v55 = vadd.f32 %v1818_v4, %v1752_v10  ;;  %v1105_v22 = vadd.f32 %v1041_v3, %v975_v59  ;;  %v1042_v61 = vmul.f32 %v3546_v39, %v708_v57  ;;  %v1171_v53 = vmul.f32 %v3550_v41, %v564_v44 }
 0x1c0   : > { %v1363_v7 = vadd.f32 %v1299_v32, %v1233_v27  ;;  %v1753_v40 = vadd.f32 %v1689_v9, %v1623_v49  ;;  %v976_v21 = vadd.f32 %v912_v54, %v846_v51  ;;  %v1301_v1 = vmul.f32 %v3555_v2, %v636_v25  ;;  %v568_v51 = vld [vmem:[#allocation2 + $0x348] sm:$0xff] }
 0x1c1   : > { %1946 = vst [vmem:[%s3007_s24 + $0x1c0] sm:$0xff] %v1882_v55  ;;  %v780_v12 = vmul.f32 %v3515_v18, %v565_v16  ;;  %v1431_v50 = vmul.f32 %v3560_v33, %v708_v57  ;;  %v1560_v31 = vmul.f32 %v3564_v26, %v564_v44  ;;  %v1234_v47 = vadd.f32 %v1170_v23, %v1103_v30  ;;  %v566_v18 = vld [vmem:[#allocation2 + $0x330] sm:$0xff]  ;;  %v567_v44 = vld [vmem:[#allocation2 + $0x338] sm:$0xff] }
 0x1c2   : > { %v1493_v60 = vadd.f32 %v1429_v5, %v1363_v7  ;;  %v1883_v37 = vadd.f32 %v1819_v35, %v1753_v40  ;;  %v1690_v58 = vmul.f32 %v3583_v8, %v636_v25  ;;  %v913_v13 = vmul.f32 %v3526_v38, %v637_v0 }
 0x1c3   : > { %v847_v63 = vadd.f32 %v3522_v29, %v780_v12  ;;  %v1820_v36 = vmul.f32 %v3572_v24, %v708_v57  ;;  %v1043_v20 = vmul.f32 %v3546_v39, %v709_v45  ;;  %v1364_v15 = vadd.f32 %v1300_v11, %v1234_v47  ;;  %v639_v11 = vld [vmem:[#allocation2 + $0x339] sm:$0xff] }
 0x1c4   : > { %v1624_v32 = vadd.f32 %v1560_v31, %v1493_v60  ;;  %1947 = vst [vmem:[%s3007_s24 + $0x1c8] sm:$0xff] %v1883_v37  ;;  %v1106_v46 = vadd.f32 %v1042_v61, %v976_v21  ;;  %v1172_v34 = vmul.f32 %v3550_v41, %v565_v16  ;;  %v1235_v30 = vadd.f32 %v1171_v53, %v1104_v28  ;;  %v641_v21 = vld [vmem:[#allocation2 + $0x351] sm:$0xff] }
 0x1c5   : > { %v977_v5 = vadd.f32 %v913_v13, %v847_v63  ;;  %v1302_v19 = vmul.f32 %v3555_v2, %v637_v0  ;;  %v1494_v29 = vadd.f32 %v1430_v62, %v1364_v15  ;;  %v1561_v38 = vmul.f32 %v3564_v26, %v565_v16  ;;  %v711_v16 = vld [vmem:[#allocation2 + $0x33a] sm:$0xff] }
 0x1c6   : > { %v1754_v56 = vadd.f32 %v1690_v58, %v1624_v32  ;;  %v1432_v48 = vmul.f32 %v3560_v33, %v709_v45  ;;  %v1691_v39 = vmul.f32 %v3583_v8, %v637_v0  ;;  %v1173_v4 = vmul.f32 %v3550_v41, %v566_v18  ;;  %v712_v58 = vld [vmem:[#allocation2 + $0x34a] sm:$0xff] }
 0x1c7   : > { %v1365_v3 = vadd.f32 %v1301_v1, %v1235_v30  ;;  %v1107_v59 = vadd.f32 %v1043_v20, %v977_v5  ;;  %v1625_v28 = vadd.f32 %v1561_v38, %v1494_v29  ;;  %v1174_v23 = vmul.f32 %v3550_v41, %v567_v44  ;;  %v713_v20 = vld [vmem:[#allocation2 + $0x352] sm:$0xff] }
 0x1c8   : > { %v1884_v6 = vadd.f32 %v1820_v36, %v1754_v56  ;;  %v1821_v25 = vmul.f32 %v3572_v24, %v709_v45  ;;  %v1562_v10 = vmul.f32 %v3564_v26, %v566_v18  ;;  %v1236_v43 = vadd.f32 %v1172_v34, %v1105_v22  ;;  %v640_v45 = vld [vmem:[#allocation2 + $0x349] sm:$0xff] }
 0x1c9   : > { %v1495_v14 = vadd.f32 %v1431_v50, %v1365_v3  ;;  %v1755_v52 = vadd.f32 %v1691_v39, %v1625_v28  ;;  %v1303_v57 = vmul.f32 %v3555_v2, %v638_v42  ;;  %v1433_v62 = vmul.f32 %v3560_v33, %v710_v17  ;;  %v2232_v50 = vld [vmem:[#allocation2 + $0x8] sm:$0xff] }
 0x1ca   : > { %1948 = vst [vmem:[%s3007_s24 + $0x1d0] sm:$0xff] %v1884_v6  ;;  %v1692_v9 = vmul.f32 %v3583_v8, %v638_v42  ;;  %v1822_v41 = vmul.f32 %v3572_v24, %v710_v17  ;;  %v1366_v55 = vadd.f32 %v1302_v19, %v1236_v43  ;;  %v1237_v49 = vadd.f32 %v1173_v4, %v1106_v46 }
 0x1cb   : > { %v1626_v27 = vadd.f32 %v1562_v10, %v1495_v14  ;;  %v1885_v35 = vadd.f32 %v1821_v25, %v1755_v52  ;;  %v1304_v54 = vmul.f32 %v3555_v2, %v639_v11  ;;  %v1563_v22 = vmul.f32 %v3564_v26, %v567_v44 }
 0x1cc   : > { %v1238_v61 = vadd.f32 %v1174_v23, %v1107_v59  ;;  %v1496_v7 = vadd.f32 %v1432_v48, %v1366_v55  ;;  %v1367_v0 = vadd.f32 %v1303_v57, %v1237_v49  ;;  %v1564_v40 = vmul.f32 %v3564_v26, %v568_v51 }
 0x1cd   : > { %v1756_v53 = vadd.f32 %v1692_v9, %v1626_v27  ;;  %1949 = vst [vmem:[%s3007_s24 + $0x1d8] sm:$0xff] %v1885_v35  ;;  %v1434_v1 = vmul.f32 %v3560_v33, %v711_v16  ;;  %v1565_v2 = vmul.f32 %v2232_v50, %v3564_v26  ;;  %v1693_v47 = vmul.f32 %v3583_v8, %v639_v11 }
 0x1ce   : > { %v1368_v12 = vadd.f32 %v1304_v54, %v1238_v61  ;;  %v1627_v31 = vadd.f32 %v1563_v22, %v1496_v7  ;;  %v1497_v37 = vadd.f32 %v1433_v62, %v1367_v0  ;;  %v1695_v13 = vmul.f32 %v3583_v8, %v641_v21 }
 0x1cf   : > { %v1886_v60 = vadd.f32 %v1822_v41, %v1756_v53  ;;  %v1823_v32 = vmul.f32 %v3572_v24, %v711_v16  ;;  %v1694_v26 = vmul.f32 %v3583_v8, %v640_v45  ;;  %v1824_v5 = vmul.f32 %v3572_v24, %v712_v58 }
 0x1d0   : > { %v1498_v63 = vadd.f32 %v1434_v1, %v1368_v12  ;;  %v1757_v33 = vadd.f32 %v1693_v47, %v1627_v31  ;;  %v1628_v36 = vadd.f32 %v1564_v40, %v1497_v37  ;;  %v1825_v30 = vmul.f32 %v3572_v24, %v713_v20 }
 0x1d1   : > { %1950 = vst [vmem:[%s3007_s24 + $0x1e0] sm:$0xff] %v1886_v60 }
 0x1d2   : > { %v1629_v15 = vadd.f32 %v1565_v2, %v1498_v63  ;;  %v1887_v18 = vadd.f32 %v1823_v32, %v1757_v33  ;;  %v1758_v46 = vadd.f32 %v1694_v26, %v1628_v36 }
 0x1d4   : > { %v1759_v34 = vadd.f32 %v1695_v13, %v1629_v15  ;;  %1951 = vst [vmem:[%s3007_s24 + $0x1e8] sm:$0xff] %v1887_v18  ;;  %v1888_v44 = vadd.f32 %v1824_v5, %v1758_v46 }
 0x1d6   : > { %v1889_v56 = vadd.f32 %v1825_v30, %v1759_v34  ;;  %1952 = vst [vmem:[%s3007_s24 + $0x1f0] sm:$0xff] %v1888_v44 }
 0x1d8   : > { %1953 = vst [vmem:[%s3007_s24 + $0x1f8] sm:$0xff] %v1889_v56 }
 0x1d9   : > { %2350 = shalt.err (!%p2347_p13)
}
 0x1da   : > { %s2417_s23 = smov 128   ;;  %s2418_s5 = smov 256  }
 0x1db   : > { %s2419_s1 = smov 8  }
 0x1dc   : > { %2124 = dma.vmem_to_hbm [thread:$0]  (%p2495_p9), %s1970_s21, 8192, %s1972_s6, %s1955_s4, %s2417_s23, %s2418_s5, %s2419_s1  }
 0x1dd PF: > { %s3861_s20 = sld [smem:[#allocation13_spill]]  ;;  %p2137_p0 = pnand %p2099_p12, %p2502_p11 }
 0x1de   : > { %s3863_s12 = sld [smem:[#allocation15_spill]] }
 0x1df   : > { %p2138_p1 = pneg %p2137_p0 }
 0x1e3   : > { %s1986_s14 = sand.u32 1, %s3861_s20  }
 0x1e4   : > { %s1987_s17 = scalar_lea.sflag [#allocation5], %s1986_s14 }
 0x1e5   : > { %2384 = dma.done.wait (%p2138_p1), %s1987_s17, 8192  }
 0x1e6   : > { %2386 = vsyncadd (%p2138_p1), %s1987_s17, 4294959104  ;;  %s22_s17 = sadd.s32 1, %s3863_s12   ;;  %s3864_s27 = sld [smem:[#allocation14_spill]] }
 0x1e7   : > { %p19_p2 = scmp.ge.s32.totalorder %s22_s17, 4   ;;  %s3865_s14 = sld [smem:[#allocation17_spill]] }
 0x1e8   : > { %s3866_s25 = sld [smem:[#allocation16_spill]]  ;;  %s3867_s12 = smov %s2393_s13 }
 0x1e9   : > { %s3869_s15 = smov %s2405_s16 }
 0x1ea   :  { %21 = sbr.rel (!%p19_p2) target bundleno = 10 (0xa), region = 105 }
 0x1ec   : > { %s3868_s13 = smov %s3864_s27 }
 0x1ee   : > { %s3870_s16 = smov %s3866_s25 }
 0x1ef   :  { %1993 = vsyncpa [#allocation4], 1 }
 0x1f0   :  { %1995 = vsyncpa [#allocation4 + $0x1], 1 }
 0x1f1   :  { %1996 = vsyncpa [#allocation7], 1 }
 0x1f2   :  { %1998 = vsyncpa [#allocation7 + $0x1], 1 }
 0x1f3   :  { %1999 = vsyncpa [#allocation5], 1 }
 0x1f4   :  { %2001 = vsyncpa [#allocation5 + $0x1], 1 }

</bundles_post_ra>
